<compile_context>
chip_gen: v6e
topology: v6e:2x2x1
jax: 0.10.0
libtpu: 0.0.40
codegen_flags: <defaults>
</compile_context>

<pallas_src>
import functools

import jax
import jax.numpy as jnp
from jax.experimental import pallas as pl
from jax.experimental.pallas import tpu as pltpu


def _round_up(v, m):
    return -(-v // m) * m


def _pad_to(a, shape):
    return jnp.pad(a, [(0, t - s) for s, t in zip(a.shape, shape)])


# --------------------------------------------------------------------------
# Kernel
# --------------------------------------------------------------------------
def _initialnet_kernel(n_mid, out_w, x_ref, w0_ref, ws_ref, bs_ref, q_ref,
                       out_ref):
    """Fused packed MLP.

    x_ref : (tile, p*in_dim)  -- p batch rows packed into lanes (f32)
    w0_ref: (p*in_dim, P)     -- kron(I_p, W0), zero-padded (f32 or bf16)
    ws_ref: (L-1, P, P)       -- hidden layers + tail (mu/sig selector folded)
    bs_ref: (L, 1, P)         -- f32 biases
    q_ref : (1, out_w)        -- quantile tiled per packed group, zero-padded
    out   : (tile, out_w)     -- lane-dense (out_w = 128): [0, p*k) valid
    """
    wdt = w0_ref.dtype
    # Layer 0
    h = jnp.tanh(
        jnp.dot(x_ref[...].astype(wdt), w0_ref[...],
                preferred_element_type=jnp.float32) + bs_ref[0])
    # Middle hidden layers (full (P, P) block-diagonal matmuls)
    for i in range(n_mid):
        h = jnp.tanh(
            jnp.dot(h.astype(wdt), ws_ref[i],
                    preferred_element_type=jnp.float32) + bs_ref[i + 1])
    # Tail: last-layer weights replicate mu into lanes [0, out_w) and the
    # pre-softplus sigma into lanes [out_w, 2*out_w), K copies per packed row
    # (so both slices below are vreg-aligned, no cross-lane rotates).
    y = (jnp.dot(h.astype(wdt), ws_ref[n_mid],
                 preferred_element_type=jnp.float32) + bs_ref[n_mid + 1])
    mu = y[:, :out_w]
    sig = jnp.logaddexp(y[:, out_w:2 * out_w], 0.0)     # softplus
    out_ref[...] = sig * q_ref[...] + mu                # dense 128-lane store


# --------------------------------------------------------------------------
# One-time parameter packing (hoisted out of the per-call path)
# --------------------------------------------------------------------------
def pack_initialnet_params(weights, biases, quantile, *, pack=8,
                           mxu_dtype=jnp.float32):
    """weights[i]: (d_in_i, d_out_i) (nn.Linear weight pre-transposed);
    biases[i]: (1, d_out_i); quantile: (1, K).

    Returns (packed_arrays, meta).  Call ONCE at init; the per-call forward
    only touches x.
    """
    in_dim = weights[0].shape[0]
    k = quantile.shape[1]
    n_layers = len(weights)
    assert n_layers >= 2, "need at least one hidden layer"
    hid = [w.shape[1] for w in weights[:-1]]

    p = pack
    out_w = _round_up(p * k, 128)                 # lane-dense output width
    P = _round_up(max(p * max(hid), 2 * out_w), 128)

    eye = jnp.eye(p, dtype=jnp.float32)

    # Layer 0: kron(I_p, W0), columns padded to P.
    w0 = _pad_to(jnp.kron(eye, weights[0].astype(jnp.float32)),
                 (p * in_dim, P)).astype(mxu_dtype)
    b_list = [_pad_to(jnp.tile(biases[0].astype(jnp.float32), (1, p)), (1, P))]

    # Middle hidden layers, each padded to (P, P).
    mids = []
    for w, b in zip(weights[1:-1], biases[1:-1]):
        mids.append(_pad_to(jnp.kron(eye, w.astype(jnp.float32)), (P, P)))
        b_list.append(_pad_to(jnp.tile(b.astype(jnp.float32), (1, p)), (1, P)))

    # Tail: fold the (mu, sigma) selection + K-fold duplication into the last
    # matmul.  mu -> columns [0, p*k), pre-sigma -> columns [out_w, out_w+p*k),
    # i.e. on 128-lane boundaries so the kernel slices are vreg-aligned.
    w_last = weights[-1].astype(jnp.float32)              # (h_last, 2)
    b_last = biases[-1].astype(jnp.float32).reshape(-1)   # (2,)
    ones_k = jnp.ones((1, k), jnp.float32)
    a_mu = jnp.kron(eye, w_last[:, 0:1] @ ones_k)         # (p*h_last, p*k)
    a_sig = jnp.kron(eye, w_last[:, 1:2] @ ones_k)
    w_tail = jnp.zeros((P, P), jnp.float32)
    w_tail = w_tail.at[:a_mu.shape[0], :p * k].set(a_mu)
    w_tail = w_tail.at[:a_sig.shape[0], out_w:out_w + p * k].set(a_sig)
    b_tail = jnp.zeros((1, P), jnp.float32)
    b_tail = b_tail.at[:, :p * k].set(b_last[0])
    b_tail = b_tail.at[:, out_w:out_w + p * k].set(b_last[1])
    mids.append(w_tail)
    b_list.append(b_tail)

    w_slab = jnp.stack(mids).astype(mxu_dtype)            # (L-1, P, P)
    b_slab = jnp.stack(b_list)                             # (L,   1, P), f32
    q_vec = _pad_to(jnp.tile(quantile.astype(jnp.float32), (1, p)),
                    (1, out_w))                            # (1, out_w)

    packed = jax.device_put((w0, w_slab, b_slab, q_vec))
    meta = dict(pack=p, in_dim=in_dim, k=k, out_w=out_w, P=P,
                n_layers=n_layers)
    return packed, meta


def _default_grid_steps():
    # v7x has 2 TensorCores per chip: use an even grid >= 4 so each core gets
    # >= 2 steps (x-tile DMA of step i+1 hides under compute of step i).
    # v5e/v6e have a single TC: one step avoids fixed per-step overhead.
    try:
        kind = (jax.devices()[0].device_kind or "").lower()
    except Exception:
        kind = ""
    return 4 if "v7" in kind else 1


# --------------------------------------------------------------------------
# Per-call forward
# --------------------------------------------------------------------------
def initialnet_forward(x, packed, meta, *, tile_rows=None):
    """x: (N, in_dim).  `packed`, `meta` from pack_initialnet_params.
    Returns Q (N, K), float32."""
    w0, w_slab, b_slab, q_vec = packed
    p = meta["pack"]
    in_dim = meta["in_dim"]
    k = meta["k"]
    out_w = meta["out_w"]
    n_layers = meta["n_layers"]

    n = x.shape[0]
    n_packed_min = -(-n // p)
    if tile_rows is None:
        steps = _default_grid_steps()
        tile_rows = max(8, _round_up(-(-n_packed_min // steps), 8))
    assert tile_rows % 8 == 0

    rows_per_blk = p * tile_rows
    n_full = _round_up(n, rows_per_blk)
    x_p = jnp.pad(x.astype(jnp.float32), ((0, n_full - n), (0, 0)))
    x_p = x_p.reshape(n_full // p, p * in_dim)
    grid = n_full // rows_per_blk

    kernel = functools.partial(_initialnet_kernel, n_layers - 2, out_w)

    # NOTE: the constant-index operands (w0/w_slab/b_slab/q) could also be
    # single-buffered via pipeline_mode=pl.Buffered(1) to halve their VMEM
    # footprint; at P=256 (<2 MiB total) the default is left in place.
    out = pl.pallas_call(
        kernel,
        out_shape=jax.ShapeDtypeStruct((n_full // p, out_w), jnp.float32),
        grid_spec=pltpu.PrefetchScalarGridSpec(
            num_scalar_prefetch=0,
            grid=(grid,),
            in_specs=[
                pl.BlockSpec((tile_rows, p * in_dim), lambda i: (i, 0)),
                pl.BlockSpec(w0.shape, lambda i: (0, 0)),
                pl.BlockSpec(w_slab.shape, lambda i: (0, 0, 0)),
                pl.BlockSpec(b_slab.shape, lambda i: (0, 0, 0)),
                pl.BlockSpec(q_vec.shape, lambda i: (0, 0)),
            ],
            out_specs=pl.BlockSpec((tile_rows, out_w), lambda i: (i, 0)),
        ),
        compiler_params=pltpu.CompilerParams(
            dimension_semantics=("parallel",)),
    )(x_p, w0, w_slab, b_slab, q_vec)

    # (N/p, out_w) -> keep valid lanes -> (N, K); drop batch padding.
    return out[:, :p * k].reshape(n_full, k)[:n]


def _reference_forward(x, weights, biases, quantile):
    h = x.astype(jnp.float32)
    for w, b in zip(weights[:-1], biases[:-1]):
        h = jnp.tanh(h @ w + b)
    y = h @ weights[-1] + biases[-1]
    mu = y[:, 0:1]
    sig = jax.nn.softplus(y[:, 1:2])
    return sig @ quantile + mu


if __name__ == "__main__":
    # Shapes consistent with the module: in_dim=16, hiddens=(32, 32),
    # tau = 3 quantile levels, N = 1024 rows.
    in_dim = 16
    hiddens = (32, 32)
    taus = jnp.array([0.1, 0.5, 0.9], dtype=jnp.float32)
    n = 1024

    dims = [in_dim] + list(hiddens) + [2]
    key = jax.random.PRNGKey(0)
    keys = jax.random.split(key, 2 * (len(dims) - 1) + 1)

    weights, biases = [], []
    for i in range(1, len(dims)):
        d_in, d_out = dims[i - 1], dims[i]
        bound = 1.0 / (d_in ** 0.5)      # matches nn.Linear default init range
        w = jax.random.uniform(keys[2 * (i - 1)], (d_in, d_out),
                               minval=-bound, maxval=bound, dtype=jnp.float32)
        b = jax.random.uniform(keys[2 * (i - 1) + 1], (1, d_out),
                               minval=-bound, maxval=bound, dtype=jnp.float32)
        weights.append(w)
        biases.append(b)

    # quantile = norm.ppf(tau).reshape(1, -1)
    quantile = jax.scipy.special.ndtri(taus).reshape(1, -1).astype(jnp.float32)
    x = jax.random.normal(keys[-1], (n, in_dim), dtype=jnp.float32)

    # ---- pack parameters ONCE (hoisted out of the per-call path) ----------
    packed_f32, meta_f32 = pack_initialnet_params(weights, biases, quantile,
                                                  pack=8)
    fwd = jax.jit(lambda xx: initialnet_forward(xx, packed_f32, meta_f32))

    q_out = jax.block_until_ready(fwd(x))
    q_ref = _reference_forward(x, weights, biases, quantile)
    assert q_out.shape == (n, quantile.shape[1])
    assert jnp.allclose(q_out, q_ref, atol=1e-4, rtol=1e-4), \
        float(jnp.max(jnp.abs(q_out - q_ref)))

    # ---- bf16 MXU-operand variant (halves weight DMA / MXU pushes) --------
    packed_b16, meta_b16 = pack_initialnet_params(weights, biases, quantile,
                                                  pack=8,
                                                  mxu_dtype=jnp.bfloat16)
    q_b16 = jax.block_until_ready(
        initialnet_forward(x, packed_b16, meta_b16))
    assert jnp.allclose(q_b16, q_ref, atol=5e-2, rtol=5e-2), \
        float(jnp.max(jnp.abs(q_b16 - q_ref)))

    print("KERNEL_OK")
</pallas_src>

<mosaic_0001>
module attributes {stable_mosaic.version = 11 : i64} {
  func.func @_initialnet_kernel(%arg0: i32, %arg1: memref<128x128xf32, #tpu.memory_space<vmem>>, %arg2: memref<128x256xf32, #tpu.memory_space<vmem>>, %arg3: memref<2x256x256xf32, #tpu.memory_space<vmem>>, %arg4: memref<3x1x256xf32, #tpu.memory_space<vmem>>, %arg5: memref<1x128xf32, #tpu.memory_space<vmem>>, %arg6: memref<128x128xf32, #tpu.memory_space<vmem>>) attributes {dimension_semantics = [#tpu.dimension_semantics<parallel>], iteration_bounds = array<i64: 1>, scalar_prefetch = 0 : i64, scratch_operands = 0 : i64, tpu.core_type = #tpu.core_type<tc>, window_params = [{transform_indices = @transform_0, window_bounds = array<i64: 128, 128>}, {pipeline_mode = #tpu.pipeline_mode<synchronous>, transform_indices = @transform_1, window_bounds = array<i64: 128, 256>}, {pipeline_mode = #tpu.pipeline_mode<synchronous>, transform_indices = @transform_2, window_bounds = array<i64: 2, 256, 256>}, {pipeline_mode = #tpu.pipeline_mode<synchronous>, transform_indices = @transform_3, window_bounds = array<i64: 3, 1, 256>}, {pipeline_mode = #tpu.pipeline_mode<synchronous>, transform_indices = @transform_4, window_bounds = array<i64: 1, 128>}, {transform_indices = @transform_5, window_bounds = array<i64: 128, 128>}]} {
    %c0 = arith.constant 0 : index
    %c0_0 = arith.constant 0 : index
    %0 = vector.load %arg1[%c0, %c0_0] : memref<128x128xf32, #tpu.memory_space<vmem>>, vector<128x128xf32>
    %c0_1 = arith.constant 0 : index
    %c0_2 = arith.constant 0 : index
    %1 = vector.load %arg2[%c0_1, %c0_2] : memref<128x256xf32, #tpu.memory_space<vmem>>, vector<128x256xf32>
    %cst = arith.constant dense<0.000000e+00> : vector<128x256xf32>
    %2 = tpu.matmul %0, %1, %cst {dimension_numbers = #tpu.dot_dimension_numbers<[1], [0], [0], [1], [0, 0, 1, 1], [], []>} : vector<128x128xf32>, vector<128x256xf32>, vector<128x256xf32> -> vector<128x256xf32>
    %c0_3 = arith.constant 0 : index
    %c0_4 = arith.constant 0 : index
    %c0_5 = arith.constant 0 : index
    %3 = vector.load %arg4[%c0_3, %c0_4, %c0_5] : memref<3x1x256xf32, #tpu.memory_space<vmem>>, vector<1x1x256xf32>
    %4 = vector.shape_cast %3 : vector<1x1x256xf32> to vector<1x256xf32>
    %5 = vector.broadcast %4 : vector<1x256xf32> to vector<128x256xf32>
    %6 = arith.addf %2, %5 : vector<128x256xf32>
    %7 = math.tanh %6 : vector<128x256xf32>
    %c0_6 = arith.constant 0 : index
    %c0_7 = arith.constant 0 : index
    %c0_8 = arith.constant 0 : index
    %8 = vector.load %arg3[%c0_6, %c0_7, %c0_8] : memref<2x256x256xf32, #tpu.memory_space<vmem>>, vector<1x256x256xf32>
    %9 = vector.shape_cast %8 : vector<1x256x256xf32> to vector<256x256xf32>
    %cst_9 = arith.constant dense<0.000000e+00> : vector<128x256xf32>
    %10 = tpu.matmul %7, %9, %cst_9 {dimension_numbers = #tpu.dot_dimension_numbers<[1], [0], [0], [1], [0, 0, 1, 1], [], []>} : vector<128x256xf32>, vector<256x256xf32>, vector<128x256xf32> -> vector<128x256xf32>
    %c1 = arith.constant 1 : index
    %c0_10 = arith.constant 0 : index
    %c0_11 = arith.constant 0 : index
    %11 = vector.load %arg4[%c1, %c0_10, %c0_11] : memref<3x1x256xf32, #tpu.memory_space<vmem>>, vector<1x1x256xf32>
    %12 = vector.shape_cast %11 : vector<1x1x256xf32> to vector<1x256xf32>
    %13 = vector.broadcast %12 : vector<1x256xf32> to vector<128x256xf32>
    %14 = arith.addf %10, %13 : vector<128x256xf32>
    %15 = math.tanh %14 : vector<128x256xf32>
    %c1_12 = arith.constant 1 : index
    %c0_13 = arith.constant 0 : index
    %c0_14 = arith.constant 0 : index
    %16 = vector.load %arg3[%c1_12, %c0_13, %c0_14] : memref<2x256x256xf32, #tpu.memory_space<vmem>>, vector<1x256x256xf32>
    %17 = vector.shape_cast %16 : vector<1x256x256xf32> to vector<256x256xf32>
    %cst_15 = arith.constant dense<0.000000e+00> : vector<128x256xf32>
    %18 = tpu.matmul %15, %17, %cst_15 {dimension_numbers = #tpu.dot_dimension_numbers<[1], [0], [0], [1], [0, 0, 1, 1], [], []>} : vector<128x256xf32>, vector<256x256xf32>, vector<128x256xf32> -> vector<128x256xf32>
    %c2 = arith.constant 2 : index
    %c0_16 = arith.constant 0 : index
    %c0_17 = arith.constant 0 : index
    %19 = vector.load %arg4[%c2, %c0_16, %c0_17] : memref<3x1x256xf32, #tpu.memory_space<vmem>>, vector<1x1x256xf32>
    %20 = vector.shape_cast %19 : vector<1x1x256xf32> to vector<1x256xf32>
    %21 = vector.broadcast %20 : vector<1x256xf32> to vector<128x256xf32>
    %22 = arith.addf %18, %21 : vector<128x256xf32>
    %23 = vector.extract_strided_slice %22 {offsets = [0, 0], sizes = [128, 128], strides = [1, 1]} : vector<128x256xf32> to vector<128x128xf32>
    %24 = vector.extract_strided_slice %22 {offsets = [0, 128], sizes = [128, 128], strides = [1, 1]} : vector<128x256xf32> to vector<128x128xf32>
    %cst_18 = arith.constant 0.000000e+00 : f32
    %25 = vector.broadcast %cst_18 : f32 to vector<128x128xf32>
    %26 = arith.maximumf %24, %25 : vector<128x128xf32>
    %27 = vector.broadcast %cst_18 : f32 to vector<128x128xf32>
    %28 = arith.subf %24, %27 : vector<128x128xf32>
    %29 = arith.cmpf one, %28, %28 : vector<128x128xf32>
    %30 = vector.broadcast %cst_18 : f32 to vector<128x128xf32>
    %31 = arith.addf %24, %30 : vector<128x128xf32>
    %32 = math.absf %28 : vector<128x128xf32>
    %cst_19 = arith.constant 0.000000e+00 : f32
    %33 = vector.broadcast %cst_19 : f32 to vector<128x128xf32>
    %34 = arith.subf %33, %32 : vector<128x128xf32>
    %35 = math.exp %34 : vector<128x128xf32>
    %36 = math.log1p %35 : vector<128x128xf32>
    %37 = arith.addf %26, %36 : vector<128x128xf32>
    %38 = arith.select %29, %31, %37 : vector<128x128xi1>, vector<128x128xf32>
    %c0_20 = arith.constant 0 : index
    %c0_21 = arith.constant 0 : index
    %39 = vector.load %arg5[%c0_20, %c0_21] : memref<1x128xf32, #tpu.memory_space<vmem>>, vector<1x128xf32>
    %40 = vector.broadcast %39 : vector<1x128xf32> to vector<128x128xf32>
    %41 = arith.mulf %38, %40 : vector<128x128xf32>
    %42 = arith.addf %41, %23 : vector<128x128xf32>
    %c0_22 = arith.constant 0 : index
    %c0_23 = arith.constant 0 : index
    %43 = vector.load %arg6[%c0_22, %c0_23] : memref<128x128xf32, #tpu.memory_space<vmem>>, vector<128x128xf32>
    tpu.vector_store %arg6[%c0_22, %c0_23], %42 {strides = array<i32>} : memref<128x128xf32, #tpu.memory_space<vmem>>, vector<128x128xf32>,
    return
  }
  func.func @transform_0(%arg0: i32) -> (i32, i32) {
    %c0_i32 = arith.constant 0 : i32
    %c0_i32_0 = arith.constant 0 : i32
    return %arg0, %c0_i32 : i32, i32
  }
  func.func @transform_1(%arg0: i32) -> (i32, i32) {
    %c0_i32 = arith.constant 0 : i32
    %c0_i32_0 = arith.constant 0 : i32
    %c0_i32_1 = arith.constant 0 : i32
    return %c0_i32, %c0_i32_0 : i32, i32
  }
  func.func @transform_2(%arg0: i32) -> (i32, i32, i32) {
    %c0_i32 = arith.constant 0 : i32
    %c0_i32_0 = arith.constant 0 : i32
    %c0_i32_1 = arith.constant 0 : i32
    %c0_i32_2 = arith.constant 0 : i32
    return %c0_i32, %c0_i32_0, %c0_i32_1 : i32, i32, i32
  }
  func.func @transform_3(%arg0: i32) -> (i32, i32, i32) {
    %c0_i32 = arith.constant 0 : i32
    %c0_i32_0 = arith.constant 0 : i32
    %c0_i32_1 = arith.constant 0 : i32
    %c0_i32_2 = arith.constant 0 : i32
    return %c0_i32, %c0_i32_0, %c0_i32_1 : i32, i32, i32
  }
  func.func @transform_4(%arg0: i32) -> (i32, i32) {
    %c0_i32 = arith.constant 0 : i32
    %c0_i32_0 = arith.constant 0 : i32
    %c0_i32_1 = arith.constant 0 : i32
    return %c0_i32, %c0_i32_0 : i32, i32
  }
  func.func @transform_5(%arg0: i32) -> (i32, i32) {
    %c0_i32 = arith.constant 0 : i32
    %c0_i32_0 = arith.constant 0 : i32
    return %arg0, %c0_i32 : i32, i32
  }
}

</mosaic_0001>

<bundles_post_ra>
// kernel: _lambda_.1
= control target key start
LH: loop header
LB: loop body
LE: loop exit
PB: predicated region body
PF: predicated region fallthrough
CT: control target
= control target key end

     0   :  { %v1453_v3 = vmov 0.0   ;;  %s2681_s1 = inlined_call_operand.vmem [shape: f32[128,256], index: 1, kind: input, shape index: {}]   ;;  %s2682_s2 = inlined_call_operand.vmem [shape: f32[2,256,256], index: 2, kind: input, shape index: {}]   ;;  %s2683_s0 = inlined_call_operand.vmem [shape: f32[128,128], index: 0, kind: input, shape index: {}]   ;;  %s2684_s3 = inlined_call_operand.vmem [shape: f32[3,1,256], index: 3, kind: input, shape index: {}]   ;;  %s2685_s4 = inlined_call_operand.vmem [shape: f32[1,128], index: 4, kind: input, shape index: {}]   ;;  %s2686_s5 = inlined_call_operand.vmem [shape: f32[128,128], index: 5, kind: output, shape index: {}]  }
   0x1   :  { %v67_v0 = vld [vmem:[%s2681_s1 + $0xf8] sm:$0xff]  ;;  %v66_v1 = vld [vmem:[%s2681_s1 + $0xf0] sm:$0xff]  ;;  %v65_v2 = vld [vmem:[%s2681_s1 + $0xe8] sm:$0xff]  ;;  %144 = vmatprep.mubr.f32.mxu0 %v1453_v3 }
   0x2   :  { %80 = vmatprep.subr.mxu0 %v67_v0  ;;  %v64_v4 = vld [vmem:[%s2681_s1 + $0xe0] sm:$0xff]  ;;  %v63_v5 = vld [vmem:[%s2681_s1 + $0xd8] sm:$0xff]  ;;  %v62_v6 = vld [vmem:[%s2681_s1 + $0xd0] sm:$0xff] }
   0x3   :  { %81 = vmatpush1.msra.mxu0 %v66_v1  ;;  %v61_v7 = vld [vmem:[%s2681_s1 + $0xc8] sm:$0xff]  ;;  %v60_v8 = vld [vmem:[%s2681_s1 + $0xc0] sm:$0xff]  ;;  %v59_v9 = vld [vmem:[%s2681_s1 + $0xb8] sm:$0xff] }
   0x4   :  { %82 = vmatprep.subr.mxu0 %v65_v2  ;;  %v58_v10 = vld [vmem:[%s2681_s1 + $0xb0] sm:$0xff]  ;;  %v57_v11 = vld [vmem:[%s2681_s1 + $0xa8] sm:$0xff]  ;;  %v56_v12 = vld [vmem:[%s2681_s1 + $0xa0] sm:$0xff] }
   0x5   :  { %83 = vmatpush1.msra.mxu0 %v64_v4  ;;  %v55_v13 = vld [vmem:[%s2681_s1 + $0x98] sm:$0xff]  ;;  %v54_v14 = vld [vmem:[%s2681_s1 + $0x90] sm:$0xff]  ;;  %v53_v15 = vld [vmem:[%s2681_s1 + $0x88] sm:$0xff] }
   0x6   :  { %84 = vmatprep.subr.mxu0 %v63_v5  ;;  %v52_v16 = vld [vmem:[%s2681_s1 + $0x80] sm:$0xff]  ;;  %v51_v17 = vld [vmem:[%s2681_s1 + $0x78] sm:$0xff]  ;;  %v50_v18 = vld [vmem:[%s2681_s1 + $0x70] sm:$0xff] }
   0x7   :  { %85 = vmatpush1.msra.mxu0 %v62_v6  ;;  %v49_v19 = vld [vmem:[%s2681_s1 + $0x68] sm:$0xff]  ;;  %v304_v20 = vld [vmem:[%s2682_s2 + $0xf8] sm:$0xff]  ;;  %v303_v21 = vld [vmem:[%s2682_s2 + $0xf0] sm:$0xff] }
   0x8   :  { %86 = vmatprep.subr.mxu0 %v61_v7  ;;  %v302_v22 = vld [vmem:[%s2682_s2 + $0xe8] sm:$0xff]  ;;  %v48_v23 = vld [vmem:[%s2681_s1 + $0x60] sm:$0xff]  ;;  %350 = vmatprep.subr.mxu1 %v304_v20  ;;  %v47_v25 = vld [vmem:[%s2681_s1 + $0x58] sm:$0xff] }
   0x9   :  { %87 = vmatpush1.msra.mxu0 %v60_v8  ;;  %v301_v24 = vld [vmem:[%s2682_s2 + $0xe0] sm:$0xff]  ;;  %351 = vmatpush1.msra.mxu1 %v303_v21  ;;  %v300_v26 = vld [vmem:[%s2682_s2 + $0xd8] sm:$0xff]  ;;  %v46_v27 = vld [vmem:[%s2681_s1 + $0x50] sm:$0xff] }
   0xa   :  { %88 = vmatprep.subr.mxu0 %v59_v9  ;;  %352 = vmatprep.subr.mxu1 %v302_v22  ;;  %v299_v28 = vld [vmem:[%s2682_s2 + $0xd0] sm:$0xff]  ;;  %v45_v29 = vld [vmem:[%s2681_s1 + $0x48] sm:$0xff]  ;;  %v44_v31 = vld [vmem:[%s2681_s1 + $0x40] sm:$0xff] }
   0xb   :  { %89 = vmatpush1.msra.mxu0 %v58_v10  ;;  %353 = vmatpush1.msra.mxu1 %v301_v24  ;;  %v298_v30 = vld [vmem:[%s2682_s2 + $0xc8] sm:$0xff]  ;;  %v297_v32 = vld [vmem:[%s2682_s2 + $0xc0] sm:$0xff]  ;;  %v43_v33 = vld [vmem:[%s2681_s1 + $0x38] sm:$0xff] }
   0xc   :  { %90 = vmatprep.subr.mxu0 %v57_v11  ;;  %354 = vmatprep.subr.mxu1 %v300_v26  ;;  %v296_v34 = vld [vmem:[%s2682_s2 + $0xb8] sm:$0xff]  ;;  %v42_v35 = vld [vmem:[%s2681_s1 + $0x30] sm:$0xff]  ;;  %v41_v37 = vld [vmem:[%s2681_s1 + $0x28] sm:$0xff] }
   0xd   :  { %91 = vmatpush1.msra.mxu0 %v56_v12  ;;  %355 = vmatpush1.msra.mxu1 %v299_v28  ;;  %v295_v36 = vld [vmem:[%s2682_s2 + $0xb0] sm:$0xff]  ;;  %v294_v38 = vld [vmem:[%s2682_s2 + $0xa8] sm:$0xff]  ;;  %v40_v39 = vld [vmem:[%s2681_s1 + $0x20] sm:$0xff] }
   0xe   :  { %92 = vmatprep.subr.mxu0 %v55_v13  ;;  %356 = vmatprep.subr.mxu1 %v298_v30  ;;  %v293_v40 = vld [vmem:[%s2682_s2 + $0xa0] sm:$0xff]  ;;  %v39_v41 = vld [vmem:[%s2681_s1 + $0x18] sm:$0xff]  ;;  %v38_v43 = vld [vmem:[%s2681_s1 + $0x10] sm:$0xff] }
   0xf   :  { %93 = vmatpush1.msra.mxu0 %v54_v14  ;;  %357 = vmatpush1.msra.mxu1 %v297_v32  ;;  %v292_v42 = vld [vmem:[%s2682_s2 + $0x98] sm:$0xff]  ;;  %v291_v44 = vld [vmem:[%s2682_s2 + $0x90] sm:$0xff]  ;;  %v37_v45 = vld [vmem:[%s2681_s1 + $0x8] sm:$0xff] }
  0x10   :  { %94 = vmatprep.subr.mxu0 %v53_v15  ;;  %358 = vmatprep.subr.mxu1 %v296_v34  ;;  %v290_v46 = vld [vmem:[%s2682_s2 + $0x88] sm:$0xff]  ;;  %v36_v47 = vld [vmem:[%s2681_s1] sm:$0xff]  ;;  %v288_v50 = vld [vmem:[%s2682_s2 + $0x78] sm:$0xff] }
  0x11   :  { %95 = vmatpush1.msra.mxu0 %v52_v16  ;;  %359 = vmatpush1.msra.mxu1 %v295_v36  ;;  %v289_v48 = vld [vmem:[%s2682_s2 + $0x80] sm:$0xff]  ;;  %v287_v51 = vld [vmem:[%s2682_s2 + $0x70] sm:$0xff]  ;;  %v286_v52 = vld [vmem:[%s2682_s2 + $0x68] sm:$0xff] }
  0x12   :  { %96 = vmatprep.subr.mxu0 %v51_v17  ;;  %360 = vmatprep.subr.mxu1 %v294_v38  ;;  %v20_v49 = vld [vmem:[%s2683_s0] sm:$0xff]  ;;  %v21_v54 = vld [vmem:[%s2683_s0 + $0x8] sm:$0xff]  ;;  %v284_v55 = vld [vmem:[%s2682_s2 + $0x58] sm:$0xff] }
  0x13   :  { %97 = vmatpush1.msra.mxu0 %v50_v18  ;;  %361 = vmatpush1.msra.mxu1 %v293_v40  ;;  %v285_v53 = vld [vmem:[%s2682_s2 + $0x60] sm:$0xff]  ;;  %v283_v56 = vld [vmem:[%s2682_s2 + $0x50] sm:$0xff]  ;;  %v282_v57 = vld [vmem:[%s2682_s2 + $0x48] sm:$0xff] }
  0x14   :  { %98 = vmatprep.subr.mxu0 %v49_v19  ;;  %362 = vmatprep.subr.mxu1 %v292_v42  ;;  %v281_v58 = vld [vmem:[%s2682_s2 + $0x40] sm:$0xff]  ;;  %v22_v59 = vld [vmem:[%s2683_s0 + $0x10] sm:$0xff]  ;;  %v280_v60 = vld [vmem:[%s2682_s2 + $0x38] sm:$0xff] }
  0x15   :  { %99 = vmatpush1.msra.mxu0 %v48_v23  ;;  %363 = vmatpush1.msra.mxu1 %v291_v44  ;;  %v279_v61 = vld [vmem:[%s2682_s2 + $0x30] sm:$0xff]  ;;  %v278_v62 = vld [vmem:[%s2682_s2 + $0x28] sm:$0xff]  ;;  %v277_v63 = vld [vmem:[%s2682_s2 + $0x20] sm:$0xff] }
  0x16   :  { %100 = vmatprep.subr.mxu0 %v47_v25  ;;  %364 = vmatprep.subr.mxu1 %v290_v46  ;;  %v23_v0 = vld [vmem:[%s2683_s0 + $0x18] sm:$0xff]  ;;  %v275_v2 = vld [vmem:[%s2682_s2 + $0x10] sm:$0xff]  ;;  %v274_v4 = vld [vmem:[%s2682_s2 + $0x8] sm:$0xff] }
  0x17   :  { %101 = vmatpush1.msra.mxu0 %v46_v27  ;;  %365 = vmatpush1.msra.mxu1 %v289_v48  ;;  %v276_v1 = vld [vmem:[%s2682_s2 + $0x18] sm:$0xff]  ;;  %v273_v5 = vld [vmem:[%s2682_s2] sm:$0xff]  ;;  %v335_v8 = vld [vmem:[%s2682_s2 + $0x1f0] sm:$0xff] }
  0x18   :  { %102 = vmatprep.subr.mxu0 %v45_v29  ;;  %366 = vmatprep.subr.mxu1 %v288_v50  ;;  %v24_v6 = vld [vmem:[%s2683_s0 + $0x20] sm:$0xff]  ;;  %v336_v7 = vld [vmem:[%s2682_s2 + $0x1f8] sm:$0xff]  ;;  %v334_v9 = vld [vmem:[%s2682_s2 + $0x1e8] sm:$0xff] }
  0x19   :  { %103 = vmatpush1.msra.mxu0 %v44_v31  ;;  %367 = vmatpush1.msra.mxu1 %v287_v51  ;;  %v333_v10 = vld [vmem:[%s2682_s2 + $0x1e0] sm:$0xff]  ;;  %v25_v11 = vld [vmem:[%s2683_s0 + $0x28] sm:$0xff]  ;;  %v332_v12 = vld [vmem:[%s2682_s2 + $0x1d8] sm:$0xff] }
  0x1a   :  { %104 = vmatprep.subr.mxu0 %v43_v33  ;;  %368 = vmatprep.subr.mxu1 %v286_v52  ;;  %v331_v13 = vld [vmem:[%s2682_s2 + $0x1d0] sm:$0xff]  ;;  %v330_v14 = vld [vmem:[%s2682_s2 + $0x1c8] sm:$0xff]  ;;  %v329_v15 = vld [vmem:[%s2682_s2 + $0x1c0] sm:$0xff] }
  0x1b   :  { %105 = vmatpush1.msra.mxu0 %v42_v35  ;;  %369 = vmatpush1.msra.mxu1 %v285_v53  ;;  %v26_v16 = vld [vmem:[%s2683_s0 + $0x30] sm:$0xff]  ;;  %v328_v17 = vld [vmem:[%s2682_s2 + $0x1b8] sm:$0xff]  ;;  %v326_v19 = vld [vmem:[%s2682_s2 + $0x1a8] sm:$0xff] }
  0x1c   :  { %106 = vmatprep.subr.mxu0 %v41_v37  ;;  %370 = vmatprep.subr.mxu1 %v284_v55  ;;  %v327_v18 = vld [vmem:[%s2682_s2 + $0x1b0] sm:$0xff]  ;;  %v325_v20 = vld [vmem:[%s2682_s2 + $0x1a0] sm:$0xff]  ;;  %v27_v21 = vld [vmem:[%s2683_s0 + $0x38] sm:$0xff] }
  0x1d   :  { %107 = vmatpush1.msra.mxu0 %v40_v39  ;;  %371 = vmatpush1.msra.mxu1 %v283_v56  ;;  %v28_v22 = vld [vmem:[%s2683_s0 + $0x40] sm:$0xff]  ;;  %v29_v23 = vld [vmem:[%s2683_s0 + $0x48] sm:$0xff]  ;;  %v30_v24 = vld [vmem:[%s2683_s0 + $0x50] sm:$0xff] }
  0x1e   :  { %108 = vmatprep.subr.mxu0 %v39_v41  ;;  %372 = vmatprep.subr.mxu1 %v282_v57  ;;  %v31_v25 = vld [vmem:[%s2683_s0 + $0x58] sm:$0xff]  ;;  %v32_v26 = vld [vmem:[%s2683_s0 + $0x60] sm:$0xff]  ;;  %v33_v27 = vld [vmem:[%s2683_s0 + $0x68] sm:$0xff] }
  0x1f   :  { %109 = vmatpush1.msra.mxu0 %v38_v43  ;;  %373 = vmatpush1.msra.mxu1 %v281_v58  ;;  %v34_v28 = vld [vmem:[%s2683_s0 + $0x70] sm:$0xff]  ;;  %v35_v29 = vld [vmem:[%s2683_s0 + $0x78] sm:$0xff]  ;;  %v322_v32 = vld [vmem:[%s2682_s2 + $0x188] sm:$0xff] }
  0x20   :  { %110 = vmatprep.subr.mxu0 %v37_v45  ;;  %374 = vmatprep.subr.mxu1 %v280_v60  ;;  %v324_v30 = vld [vmem:[%s2682_s2 + $0x198] sm:$0xff]  ;;  %v323_v31 = vld [vmem:[%s2682_s2 + $0x190] sm:$0xff]  ;;  %v318_v35 = vld [vmem:[%s2682_s2 + $0x168] sm:$0xff] }
  0x21   :  { %111 = vmatpush1.msra.mxu0 %v36_v47  ;;  %375 = vmatpush1.msra.mxu1 %v279_v61  ;;  %v320_v33 = vld [vmem:[%s2682_s2 + $0x178] sm:$0xff]  ;;  %v319_v34 = vld [vmem:[%s2682_s2 + $0x170] sm:$0xff]  ;;  %v317_v36 = vld [vmem:[%s2682_s2 + $0x160] sm:$0xff] }
  0x22   :  { %145 = vmatmul.mubr.f32.vlgmr.msra.gmra.mxu0 %v20_v49  ;;  %376 = vmatprep.subr.mxu1 %v278_v62  ;;  %v316_v37 = vld [vmem:[%s2682_s2 + $0x158] sm:$0xff]  ;;  %v315_v38 = vld [vmem:[%s2682_s2 + $0x150] sm:$0xff]  ;;  %v314_v39 = vld [vmem:[%s2682_s2 + $0x148] sm:$0xff] }
  0x23   :  { %150 = vmatprep.mubr.f32.mxu0 %v1453_v3  ;;  %377 = vmatpush1.msra.mxu1 %v277_v63  ;;  %v313_v40 = vld [vmem:[%s2682_s2 + $0x140] sm:$0xff]  ;;  %v312_v41 = vld [vmem:[%s2682_s2 + $0x138] sm:$0xff]  ;;  %v311_v42 = vld [vmem:[%s2682_s2 + $0x130] sm:$0xff] }
  0x24   :  { %378 = vmatprep.subr.mxu1 %v276_v1  ;;  %v310_v43 = vld [vmem:[%s2682_s2 + $0x128] sm:$0xff]  ;;  %v309_v44 = vld [vmem:[%s2682_s2 + $0x120] sm:$0xff]  ;;  %v308_v45 = vld [vmem:[%s2682_s2 + $0x118] sm:$0xff] }
  0x25   :  { %379 = vmatpush1.msra.mxu1 %v275_v2  ;;  %v307_v46 = vld [vmem:[%s2682_s2 + $0x110] sm:$0xff]  ;;  %v306_v47 = vld [vmem:[%s2682_s2 + $0x108] sm:$0xff]  ;;  %v305_v48 = vld [vmem:[%s2682_s2 + $0x100] sm:$0xff] }
  0x26   :  { %151 = vmatmul.mubr.f32.gmra.mxu0 %v21_v54  ;;  %380 = vmatprep.subr.mxu1 %v274_v4  ;;  %v1161_v49 = vld [vmem:[%s2682_s2 + $0x2f8] sm:$0xff]  ;;  %v1842_v50 = vld [vmem:[%s2682_s2 + $0x2f0] sm:$0xff]  ;;  %v1847_v51 = vld [vmem:[%s2682_s2 + $0x2e8] sm:$0xff] }
  0x27   :  { %156 = vmatprep.mubr.f32.mxu0 %v1453_v3  ;;  %381 = vmatpush1.msra.mxu1 %v273_v5  ;;  %v1852_v52 = vld [vmem:[%s2682_s2 + $0x2e0] sm:$0xff]  ;;  %v1858_v53 = vld [vmem:[%s2682_s2 + $0x2d8] sm:$0xff]  ;;  %v1864_v54 = vld [vmem:[%s2682_s2 + $0x2d0] sm:$0xff] }
  0x28   :  { %382 = vmatprep.subr.mxu1 %v336_v7  ;;  %621 = vmatprep.subr.mxu0 %v1161_v49  ;;  %v1870_v55 = vld [vmem:[%s2682_s2 + $0x2c8] sm:$0xff]  ;;  %v1876_v56 = vld [vmem:[%s2682_s2 + $0x2c0] sm:$0xff]  ;;  %v1882_v57 = vld [vmem:[%s2682_s2 + $0x2b8] sm:$0xff] }
  0x29   :  { %383 = vmatpush2.msra.mxu1 %v335_v8  ;;  %622 = vmatpush1.msra.mxu0 %v1842_v50  ;;  %v1888_v58 = vld [vmem:[%s2682_s2 + $0x2b0] sm:$0xff]  ;;  %v1900_v60 = vld [vmem:[%s2682_s2 + $0x2a0] sm:$0xff]  ;;  %v1906_v61 = vld [vmem:[%s2682_s2 + $0x298] sm:$0xff] }
  0x2a   :  { %157 = vmatmul.mubr.f32.gmra.mxu0 %v22_v59  ;;  %384 = vmatprep.subr.mxu1 %v334_v9  ;;  %v1894_v59 = vld [vmem:[%s2682_s2 + $0x2a8] sm:$0xff]  ;;  %v1912_v62 = vld [vmem:[%s2682_s2 + $0x290] sm:$0xff]  ;;  %v1930_v1 = vld [vmem:[%s2682_s2 + $0x278] sm:$0xff] }
  0x2b   :  { %162 = vmatprep.mubr.f32.mxu0 %v1453_v3  ;;  %385 = vmatpush2.msra.mxu1 %v333_v10  ;;  %v1918_v63 = vld [vmem:[%s2682_s2 + $0x288] sm:$0xff]  ;;  %v1936_v2 = vld [vmem:[%s2682_s2 + $0x270] sm:$0xff]  ;;  %v1948_v5 = vld [vmem:[%s2682_s2 + $0x260] sm:$0xff] }
  0x2c   :  { %386 = vmatprep.subr.mxu1 %v332_v12  ;;  %623 = vmatprep.subr.mxu0 %v1847_v51  ;;  %v1942_v4 = vld [vmem:[%s2682_s2 + $0x268] sm:$0xff]  ;;  %v1960_v7 = vld [vmem:[%s2682_s2 + $0x250] sm:$0xff]  ;;  %v1972_v9 = vld [vmem:[%s2682_s2 + $0x240] sm:$0xff] }
  0x2d   :  { %387 = vmatpush2.msra.mxu1 %v331_v13  ;;  %624 = vmatpush1.msra.mxu0 %v1852_v52  ;;  %v1966_v8 = vld [vmem:[%s2682_s2 + $0x248] sm:$0xff]  ;;  %v1978_v10 = vld [vmem:[%s2682_s2 + $0x238] sm:$0xff]  ;;  %v1996_v13 = vld [vmem:[%s2682_s2 + $0x220] sm:$0xff] }
  0x2e   :  { %163 = vmatmul.mubr.f32.gmra.mxu0 %v23_v0  ;;  %388 = vmatprep.subr.mxu1 %v330_v14  ;;  %v1924_v0 = vld [vmem:[%s2682_s2 + $0x280] sm:$0xff]  ;;  %v1990_v12 = vld [vmem:[%s2682_s2 + $0x228] sm:$0xff]  ;;  %v2002_v14 = vld [vmem:[%s2682_s2 + $0x218] sm:$0xff] }
  0x2f   :  { %168 = vmatprep.mubr.f32.mxu0 %v1453_v3  ;;  %389 = vmatpush2.msra.mxu1 %v329_v15  ;;  %v2008_v15 = vld [vmem:[%s2682_s2 + $0x210] sm:$0xff] }
  0x30   :  { %390 = vmatprep.subr.mxu1 %v328_v17  ;;  %625 = vmatprep.subr.mxu0 %v1858_v53  ;;  %v2020_v17 = vld [vmem:[%s2682_s2 + $0x200] sm:$0xff] }
  0x31   :  { %391 = vmatpush2.msra.mxu1 %v327_v18  ;;  %626 = vmatpush1.msra.mxu0 %v1864_v54  ;;  %v2026_v18 = vld [vmem:[%s2682_s2 + $0x3f8] sm:$0xff] }
  0x32   :  { %169 = vmatmul.mubr.f32.gmra.mxu0 %v24_v6  ;;  %392 = vmatprep.subr.mxu1 %v326_v19  ;;  %v1954_v6 = vld [vmem:[%s2682_s2 + $0x258] sm:$0xff]  ;;  %v2032_v19 = vld [vmem:[%s2682_s2 + $0x3f0] sm:$0xff] }
  0x33   :  { %174 = vmatprep.mubr.f32.mxu0 %v1453_v3  ;;  %393 = vmatpush2.msra.mxu1 %v325_v20  ;;  %v2038_v20 = vld [vmem:[%s2682_s2 + $0x3e8] sm:$0xff] }
  0x34   :  { %394 = vmatprep.subr.mxu1 %v324_v30  ;;  %627 = vmatprep.subr.mxu0 %v1870_v55  ;;  %v2086_v30 = vld [vmem:[%s2682_s2 + $0x3a8] sm:$0xff] }
  0x35   :  { %395 = vmatpush2.msra.mxu1 %v323_v31  ;;  %628 = vmatpush1.msra.mxu0 %v1876_v56  ;;  %v2092_v31 = vld [vmem:[%s2682_s2 + $0x3a0] sm:$0xff] }
  0x36   :  { %175 = vmatmul.mubr.f32.gmra.mxu0 %v25_v11  ;;  %396 = vmatprep.subr.mxu1 %v322_v32  ;;  %v1984_v11 = vld [vmem:[%s2682_s2 + $0x230] sm:$0xff] }
  0x37   :  { %180 = vmatprep.mubr.f32.mxu0 %v1453_v3  ;;  %629 = vmatprep.subr.mxu0 %v1882_v57 }
  0x38   :  { %630 = vmatpush1.msra.mxu0 %v1888_v58 }
  0x39   :  { %631 = vmatprep.subr.mxu0 %v1894_v59 }
  0x3a   :  { %181 = vmatmul.mubr.f32.gmra.mxu0 %v26_v16  ;;  %v2014_v16 = vld [vmem:[%s2682_s2 + $0x208] sm:$0xff] }
  0x3b   :  { %186 = vmatprep.mubr.f32.mxu0 %v1453_v3  ;;  %632 = vmatpush1.msra.mxu0 %v1900_v60 }
  0x3c   :  { %633 = vmatprep.subr.mxu0 %v1906_v61 }
  0x3d   :  { %634 = vmatpush1.msra.mxu0 %v1912_v62 }
  0x3e   :  { %187 = vmatmul.mubr.f32.gmra.mxu0 %v27_v21  ;;  %635 = vmatprep.subr.mxu0 %v1918_v63  ;;  %v2044_v21 = vld [vmem:[%s2682_s2 + $0x3e0] sm:$0xff] }
  0x3f   :  { %192 = vmatprep.mubr.f32.mxu0 %v1453_v3  ;;  %636 = vmatpush1.msra.mxu0 %v1924_v0 }
  0x40   :  { %637 = vmatprep.subr.mxu0 %v1930_v1 }
  0x41   :  { %638 = vmatpush1.msra.mxu0 %v1936_v2 }
  0x42   :  { %193 = vmatmul.mubr.f32.gmra.mxu0 %v28_v22  ;;  %639 = vmatprep.subr.mxu0 %v1942_v4  ;;  %v70_v22 = vlaneseq }
  0x43   :  { %198 = vmatprep.mubr.f32.mxu0 %v1453_v3  ;;  %640 = vmatpush1.msra.mxu0 %v1948_v5 }
  0x44   :  { %641 = vmatprep.subr.mxu0 %v1954_v6 }
  0x45   :  { %642 = vmatpush1.msra.mxu0 %v1960_v7 }
  0x46   :  { %199 = vmatmul.mubr.f32.gmra.mxu0 %v29_v23  ;;  %643 = vmatprep.subr.mxu0 %v1966_v8  ;;  %v2050_v23 = vld [vmem:[%s2682_s2 + $0x3d8] sm:$0xff] }
  0x47   :  { %204 = vmatprep.mubr.f32.mxu0 %v1453_v3  ;;  %644 = vmatpush1.msra.mxu0 %v1972_v9 }
  0x48   :  { %645 = vmatprep.subr.mxu0 %v1978_v10 }
  0x49   :  { %646 = vmatpush1.msra.mxu0 %v1984_v11 }
  0x4a   :  { %205 = vmatmul.mubr.f32.gmra.mxu0 %v30_v24  ;;  %647 = vmatprep.subr.mxu0 %v1990_v12  ;;  %v2056_v24 = vld [vmem:[%s2682_s2 + $0x3d0] sm:$0xff] }
  0x4b   :  { %210 = vmatprep.mubr.f32.mxu0 %v1453_v3  ;;  %648 = vmatpush1.msra.mxu0 %v1996_v13 }
  0x4c   :  { %649 = vmatprep.subr.mxu0 %v2002_v14 }
  0x4d   :  { %650 = vmatpush1.msra.mxu0 %v2008_v15 }
  0x4e   :  { %211 = vmatmul.mubr.f32.gmra.mxu0 %v31_v25  ;;  %651 = vmatprep.subr.mxu0 %v2014_v16  ;;  %v2062_v25 = vld [vmem:[%s2682_s2 + $0x3c8] sm:$0xff] }
  0x4f   :  { %216 = vmatprep.mubr.f32.mxu0 %v1453_v3  ;;  %652 = vmatpush1.msra.mxu0 %v2020_v17 }
  0x50   :  { %653 = vmatprep.subr.mxu0 %v2026_v18 }
  0x51   :  { %654 = vmatpush2.msra.mxu0 %v2032_v19 }
  0x52   :  { %217 = vmatmul.mubr.f32.gmra.mxu0 %v32_v26  ;;  %655 = vmatprep.subr.mxu0 %v2038_v20  ;;  %v2068_v26 = vld [vmem:[%s2682_s2 + $0x3c0] sm:$0xff] }
  0x53   :  { %222 = vmatprep.mubr.f32.mxu0 %v1453_v3  ;;  %656 = vmatpush2.msra.mxu0 %v2044_v21 }
  0x54   :  { %657 = vmatprep.subr.mxu0 %v2050_v23 }
  0x55   :  { %658 = vmatpush2.msra.mxu0 %v2056_v24 }
  0x56   :  { %223 = vmatmul.mubr.f32.gmra.mxu0 %v33_v27  ;;  %v71_v27 = vshrl.u32 %v70_v22, 7  ;;  %659 = vmatprep.subr.mxu0 %v2062_v25 }
  0x57   :  { %228 = vmatprep.mubr.f32.mxu0 %v1453_v3  ;;  %660 = vmatpush2.msra.mxu0 %v2068_v26 }
  0x58   :  { %v2094_v32 = vsub.s32 0, %v71_v27 }
  0x5a   :  { %229 = vmatmul.mubr.f32.gmra.mxu0 %v34_v28  ;;  %v2074_v28 = vld [vmem:[%s2682_s2 + $0x3b8] sm:$0xff] }
  0x5b   :  { %234 = vmatprep.mubr.f32.mxu0 %v1453_v3  ;;  %v321_v3 = vld [vmem:[%s2682_s2 + $0x180] sm:$0xff]  ;;  %661 = vmatprep.subr.mxu0 %v2074_v28 }
  0x5c   :  { %397 = vmatpush2.msra.mxu1 %v321_v3  ;;  %v68_v3 = vld [vmem:[%s2684_s3] sm:$0x3] }
  0x5d   :  { %398 = vmatprep.subr.mxu1 %v320_v33  ;;  %v2100_v33 = vsub.s32 1, %v71_v27 }
  0x5e   :  { %235 = vmatmul.mubr.f32.gmra.mxu0 %v35_v29  ;;  %399 = vmatpush2.msra.mxu1 %v319_v34  ;;  %v2080_v29 = vld [vmem:[%s2682_s2 + $0x3b0] sm:$0xff]  ;;  %v2105_v34 = vrot.slane %v68_v3, %v2094_v32 }
  0x5f   :  { %400 = vmatprep.subr.mxu1 %v318_v35  ;;  %662 = vmatpush2.msra.mxu0 %v2080_v29  ;;  %v2108_v35 = vrot.slane %v68_v3, %v2100_v33 }
  0x60   :  { %401 = vmatpush2.msra.mxu1 %v317_v36  ;;  %663 = vmatprep.subr.mxu0 %v2086_v30 }
  0x61   :  { %402 = vmatprep.subr.mxu1 %v316_v37  ;;  %664 = vmatpush2.msra.mxu0 %v2092_v31 }
  0x62   :  { %403 = vmatpush2.msra.mxu1 %v315_v38 }
  0x63   :  { %404 = vmatprep.subr.mxu1 %v314_v39 }
  0x64   :  { %405 = vmatpush2.msra.mxu1 %v313_v40 }
  0x65   :  { %406 = vmatprep.subr.mxu1 %v312_v41 }
  0x66   :  { %407 = vmatpush2.msra.mxu1 %v311_v42 }
  0x67   :  { %408 = vmatprep.subr.mxu1 %v310_v43 }
  0x68   :  { %409 = vmatpush2.msra.mxu1 %v309_v44 }
  0x69   :  { %410 = vmatprep.subr.mxu1 %v308_v45 }
  0x6a   :  { %411 = vmatpush2.msra.mxu1 %v307_v46 }
  0x6b   :  { %412 = vmatprep.subr.mxu1 %v306_v47 }
  0x6c   :  { %413 = vmatpush2.msra.mxu1 %v305_v48 }
  0x6d   :  { %1196 = vmatprep.subr.mxu1 %v1161_v49 }
  0xe2   :  { %v146_v36 = vpop.f32.mrf.mxu0 }
  0xe3   :  { %v147_v37 = vadd.f32 %v146_v36, %v2105_v34 }
  0xe4   :  { %v148_v38 = vpop.f32.mrf.mxu0 }
  0xe5   :  { %v149_v39 = vadd.f32 %v148_v38, %v2108_v35 }
  0xe6   :  { %v152_v40 = vpop.f32.mrf.mxu0 }
  0xe7   :  { %1261 = vtanh.f32 %v149_v39  ;;  %v153_v41 = vadd.f32 %v152_v40, %v2105_v34 }
  0xe8   :  { %1263 = vtanh.f32 %v147_v37  ;;  %v154_v42 = vpop.f32.mrf.mxu0 }
  0xe9   :  { %v155_v43 = vadd.f32 %v154_v42, %v2108_v35 }
  0xea   :  { %v158_v44 = vpop.f32.mrf.mxu0 }
  0xeb   :  { %1265 = vtanh.f32 %v155_v43  ;;  %v159_v45 = vadd.f32 %v158_v44, %v2105_v34 }
  0xec   :  { %1267 = vtanh.f32 %v153_v41  ;;  %v160_v46 = vpop.f32.mrf.mxu0 }
  0xed   :  { %v161_v47 = vadd.f32 %v160_v46, %v2108_v35 }
  0xee   :  { %v164_v48 = vpop.f32.mrf.mxu0 }
  0xef   :  { %1269 = vtanh.f32 %v161_v47  ;;  %v165_v49 = vadd.f32 %v164_v48, %v2105_v34 }
  0xf0   :  { %1271 = vtanh.f32 %v159_v45  ;;  %v166_v22 = vpop.f32.mrf.mxu0 }
  0xf1   :  { %v167_v27 = vadd.f32 %v166_v22, %v2108_v35 }
  0xf2   :  { %v170_v3 = vpop.f32.mrf.mxu0 }
  0xf3   :  { %1273 = vtanh.f32 %v167_v27  ;;  %v171_v37 = vadd.f32 %v170_v3, %v2105_v34 }
  0xf4   :  { %v1262_v36 = vpop.eup %1261  ;;  %1275 = vtanh.f32 %v165_v49  ;;  %v172_v38 = vpop.f32.mrf.mxu0 }
  0xf5   :  { %v1264_v39 = vpop.eup %1263  ;;  %v173_v40 = vadd.f32 %v172_v38, %v2108_v35  ;;  %414 = vmatprep.mubr.f32.mxu1 %v1262_v36 }
  0xf6   :  { %v176_v41 = vpop.f32.mrf.mxu0  ;;  %415 = vmatmul.mubr.f32.vlgmr.msra.gmra.mxu1 %v1264_v39 }
  0xf7   :  { %1277 = vtanh.f32 %v173_v40  ;;  %1228 = vmatpush1.msra.mxu1 %v1842_v50  ;;  %v177_v43 = vadd.f32 %v176_v41, %v2105_v34 }
  0xf8   :  { %v1266_v42 = vpop.eup %1265  ;;  %1279 = vtanh.f32 %v171_v37  ;;  %v178_v44 = vpop.f32.mrf.mxu0  ;;  %1197 = vmatprep.subr.mxu1 %v1847_v51 }
  0xf9   :  { %v1268_v45 = vpop.eup %1267  ;;  %v179_v46 = vadd.f32 %v178_v44, %v2108_v35  ;;  %420 = vmatprep.mubr.f32.mxu1 %v1266_v42  ;;  %1229 = vmatpush1.msra.mxu1 %v1852_v52 }
  0xfa   :  { %v182_v47 = vpop.f32.mrf.mxu0  ;;  %421 = vmatmul.mubr.f32.gmra.mxu1 %v1268_v45  ;;  %1198 = vmatprep.subr.mxu1 %v1858_v53 }
  0xfb   :  { %1281 = vtanh.f32 %v179_v46  ;;  %1230 = vmatpush1.msra.mxu1 %v1864_v54  ;;  %v183_v48 = vadd.f32 %v182_v47, %v2105_v34 }
  0xfc   :  { %v1270_v50 = vpop.eup %1269  ;;  %1283 = vtanh.f32 %v177_v43  ;;  %v184_v49 = vpop.f32.mrf.mxu0  ;;  %1199 = vmatprep.subr.mxu1 %v1870_v55 }
  0xfd   :  { %v1272_v51 = vpop.eup %1271  ;;  %v185_v22 = vadd.f32 %v184_v49, %v2108_v35  ;;  %426 = vmatprep.mubr.f32.mxu1 %v1270_v50  ;;  %1231 = vmatpush1.msra.mxu1 %v1876_v56 }
  0xfe   :  { %v188_v52 = vpop.f32.mrf.mxu0  ;;  %427 = vmatmul.mubr.f32.gmra.mxu1 %v1272_v51  ;;  %1200 = vmatprep.subr.mxu1 %v1882_v57 }
  0xff   :  { %1285 = vtanh.f32 %v185_v22  ;;  %1232 = vmatpush1.msra.mxu1 %v1888_v58  ;;  %v189_v54 = vadd.f32 %v188_v52, %v2105_v34 }
 0x100   :  { %v1274_v53 = vpop.eup %1273  ;;  %1287 = vtanh.f32 %v183_v48  ;;  %v190_v27 = vpop.f32.mrf.mxu0  ;;  %1201 = vmatprep.subr.mxu1 %v1894_v59 }
 0x101   :  { %v1276_v55 = vpop.eup %1275  ;;  %v191_v3 = vadd.f32 %v190_v27, %v2108_v35  ;;  %432 = vmatprep.mubr.f32.mxu1 %v1274_v53  ;;  %1233 = vmatpush1.msra.mxu1 %v1900_v60  ;;  %v1180_v53 = vld [vmem:[%s2682_s2 + $0x390] sm:$0xff]  ;;  %v1178_v27 = vld [vmem:[%s2682_s2 + $0x380] sm:$0xff] }
 0x102   :  { %v194_v56 = vpop.f32.mrf.mxu0  ;;  %433 = vmatmul.mubr.f32.gmra.mxu1 %v1276_v55  ;;  %1202 = vmatprep.subr.mxu1 %v1906_v61  ;;  %v1177_v55 = vld [vmem:[%s2682_s2 + $0x378] sm:$0xff] }
 0x103   :  { %1289 = vtanh.f32 %v191_v3  ;;  %1234 = vmatpush1.msra.mxu1 %v1912_v62  ;;  %v195_v58 = vadd.f32 %v194_v56, %v2105_v34  ;;  %v1176_v3 = vld [vmem:[%s2682_s2 + $0x370] sm:$0xff]  ;;  %v1175_v56 = vld [vmem:[%s2682_s2 + $0x368] sm:$0xff] }
 0x104   :  { %v1278_v57 = vpop.eup %1277  ;;  %1291 = vtanh.f32 %v189_v54  ;;  %v196_v36 = vpop.f32.mrf.mxu0  ;;  %1203 = vmatprep.subr.mxu1 %v1918_v63  ;;  %v1179_v54 = vld [vmem:[%s2682_s2 + $0x388] sm:$0xff] }
 0x105   :  { %v1280_v59 = vpop.eup %1279  ;;  %v197_v37 = vadd.f32 %v196_v36, %v2108_v35  ;;  %438 = vmatprep.mubr.f32.mxu1 %v1278_v57  ;;  %1235 = vmatpush1.msra.mxu1 %v1924_v0  ;;  %v1174_v57 = vld [vmem:[%s2682_s2 + $0x360] sm:$0xff]  ;;  %v1172_v36 = vld [vmem:[%s2682_s2 + $0x350] sm:$0xff] }
 0x106   :  { %v200_v60 = vpop.f32.mrf.mxu0  ;;  %439 = vmatmul.mubr.f32.gmra.mxu1 %v1280_v59  ;;  %1204 = vmatprep.subr.mxu1 %v1930_v1  ;;  %v1171_v59 = vld [vmem:[%s2682_s2 + $0x348] sm:$0xff] }
 0x107   :  { %1293 = vtanh.f32 %v197_v37  ;;  %1236 = vmatpush1.msra.mxu1 %v1936_v2  ;;  %v201_v62 = vadd.f32 %v200_v60, %v2105_v34  ;;  %v1170_v37 = vld [vmem:[%s2682_s2 + $0x340] sm:$0xff]  ;;  %v1169_v60 = vld [vmem:[%s2682_s2 + $0x338] sm:$0xff] }
 0x108   :  { %v1282_v61 = vpop.eup %1281  ;;  %1295 = vtanh.f32 %v195_v58  ;;  %v202_v38 = vpop.f32.mrf.mxu0  ;;  %1205 = vmatprep.subr.mxu1 %v1942_v4  ;;  %v1173_v58 = vld [vmem:[%s2682_s2 + $0x358] sm:$0xff] }
 0x109   :  { %v1284_v63 = vpop.eup %1283  ;;  %v203_v39 = vadd.f32 %v202_v38, %v2108_v35  ;;  %444 = vmatprep.mubr.f32.mxu1 %v1282_v61  ;;  %1237 = vmatpush1.msra.mxu1 %v1948_v5  ;;  %v1168_v61 = vld [vmem:[%s2682_s2 + $0x330] sm:$0xff]  ;;  %v1166_v38 = vld [vmem:[%s2682_s2 + $0x320] sm:$0xff] }
 0x10a   :  { %v206_v0 = vpop.f32.mrf.mxu0  ;;  %445 = vmatmul.mubr.f32.gmra.mxu1 %v1284_v63  ;;  %1206 = vmatprep.subr.mxu1 %v1954_v6  ;;  %v1165_v63 = vld [vmem:[%s2682_s2 + $0x318] sm:$0xff] }
 0x10b   :  { %1297 = vtanh.f32 %v203_v39  ;;  %1238 = vmatpush1.msra.mxu1 %v1960_v7  ;;  %v207_v2 = vadd.f32 %v206_v0, %v2105_v34  ;;  %v1164_v39 = vld [vmem:[%s2682_s2 + $0x310] sm:$0xff]  ;;  %v1163_v0 = vld [vmem:[%s2682_s2 + $0x308] sm:$0xff] }
 0x10c   :  { %v1286_v1 = vpop.eup %1285  ;;  %1299 = vtanh.f32 %v201_v62  ;;  %v208_v40 = vpop.f32.mrf.mxu0  ;;  %1207 = vmatprep.subr.mxu1 %v1966_v8  ;;  %v1167_v62 = vld [vmem:[%s2682_s2 + $0x328] sm:$0xff] }
 0x10d   :  { %v1288_v4 = vpop.eup %1287  ;;  %v209_v41 = vadd.f32 %v208_v40, %v2108_v35  ;;  %450 = vmatprep.mubr.f32.mxu1 %v1286_v1  ;;  %1239 = vmatpush1.msra.mxu1 %v1972_v9  ;;  %v1162_v1 = vld [vmem:[%s2682_s2 + $0x300] sm:$0xff] }
 0x10e   :  { %v212_v5 = vpop.f32.mrf.mxu0  ;;  %451 = vmatmul.mubr.f32.gmra.mxu1 %v1288_v4  ;;  %1208 = vmatprep.subr.mxu1 %v1978_v10 }
 0x10f   :  { %1301 = vtanh.f32 %v209_v41  ;;  %1240 = vmatpush1.msra.mxu1 %v1984_v11  ;;  %v213_v7 = vadd.f32 %v212_v5, %v2105_v34 }
 0x110   :  { %v1290_v6 = vpop.eup %1289  ;;  %1303 = vtanh.f32 %v207_v2  ;;  %v214_v42 = vpop.f32.mrf.mxu0  ;;  %1209 = vmatprep.subr.mxu1 %v1990_v12  ;;  %v1129_v2 = vld [vmem:[%s2684_s3 + $0x2] sm:$0x3] }
 0x111   :  { %v1292_v8 = vpop.eup %1291  ;;  %v215_v43 = vadd.f32 %v214_v42, %v2108_v35  ;;  %456 = vmatprep.mubr.f32.mxu1 %v1290_v6  ;;  %1241 = vmatpush1.msra.mxu1 %v1996_v13  ;;  %v2249_v40 = vrot.slane %v1129_v2, %v2094_v32  ;;  %v2252_v4 = vrot.slane %v1129_v2, %v2100_v33 }
 0x112   :  { %v218_v9 = vpop.f32.mrf.mxu0  ;;  %457 = vmatmul.mubr.f32.gmra.mxu1 %v1292_v8  ;;  %1210 = vmatprep.subr.mxu1 %v2002_v14 }
 0x113   :  { %1305 = vtanh.f32 %v215_v43  ;;  %1242 = vmatpush1.msra.mxu1 %v2008_v15  ;;  %v219_v11 = vadd.f32 %v218_v9, %v2105_v34 }
 0x114   :  { %v1294_v10 = vpop.eup %1293  ;;  %1307 = vtanh.f32 %v213_v7  ;;  %v220_v44 = vpop.f32.mrf.mxu0  ;;  %1211 = vmatprep.subr.mxu1 %v2014_v16 }
 0x115   :  { %v1296_v12 = vpop.eup %1295  ;;  %v221_v45 = vadd.f32 %v220_v44, %v2108_v35  ;;  %462 = vmatprep.mubr.f32.mxu1 %v1294_v10  ;;  %1243 = vmatpush1.msra.mxu1 %v2020_v17 }
 0x116   :  { %v224_v13 = vpop.f32.mrf.mxu0  ;;  %463 = vmatmul.mubr.f32.gmra.mxu1 %v1296_v12  ;;  %1212 = vmatprep.subr.mxu1 %v2026_v18 }
 0x117   :  { %1309 = vtanh.f32 %v221_v45  ;;  %1244 = vmatpush2.msra.mxu1 %v2032_v19  ;;  %v225_v15 = vadd.f32 %v224_v13, %v2105_v34 }
 0x118   :  { %v1298_v14 = vpop.eup %1297  ;;  %1311 = vtanh.f32 %v219_v11  ;;  %v226_v46 = vpop.f32.mrf.mxu0  ;;  %1213 = vmatprep.subr.mxu1 %v2038_v20 }
 0x119   :  { %v1300_v16 = vpop.eup %1299  ;;  %v227_v47 = vadd.f32 %v226_v46, %v2108_v35  ;;  %468 = vmatprep.mubr.f32.mxu1 %v1298_v14  ;;  %1245 = vmatpush2.msra.mxu1 %v2044_v21 }
 0x11a   :  { %v230_v17 = vpop.f32.mrf.mxu0  ;;  %469 = vmatmul.mubr.f32.gmra.mxu1 %v1300_v16  ;;  %1214 = vmatprep.subr.mxu1 %v2050_v23 }
 0x11b   :  { %1313 = vtanh.f32 %v227_v47  ;;  %1246 = vmatpush2.msra.mxu1 %v2056_v24  ;;  %v231_v19 = vadd.f32 %v230_v17, %v2105_v34 }
 0x11c   :  { %v1302_v18 = vpop.eup %1301  ;;  %1315 = vtanh.f32 %v225_v15  ;;  %v232_v50 = vpop.f32.mrf.mxu0  ;;  %1215 = vmatprep.subr.mxu1 %v2062_v25 }
 0x11d   :  { %v1304_v20 = vpop.eup %1303  ;;  %v233_v48 = vadd.f32 %v232_v50, %v2108_v35  ;;  %474 = vmatprep.mubr.f32.mxu1 %v1302_v18  ;;  %1247 = vmatpush2.msra.mxu1 %v2068_v26 }
 0x11e   :  { %v236_v21 = vpop.f32.mrf.mxu0  ;;  %475 = vmatmul.mubr.f32.gmra.mxu1 %v1304_v20  ;;  %1216 = vmatprep.subr.mxu1 %v2074_v28 }
 0x11f   :  { %1317 = vtanh.f32 %v233_v48  ;;  %1248 = vmatpush2.msra.mxu1 %v2080_v29  ;;  %v237_v24 = vadd.f32 %v236_v21, %v2105_v34 }
 0x120   :  { %v1306_v23 = vpop.eup %1305  ;;  %1319 = vtanh.f32 %v231_v19  ;;  %v238_v49 = vpop.f32.mrf.mxu0  ;;  %1217 = vmatprep.subr.mxu1 %v2086_v30 }
 0x121   :  { %v1308_v25 = vpop.eup %1307  ;;  %v239_v51 = vadd.f32 %v238_v49, %v2108_v35  ;;  %480 = vmatprep.mubr.f32.mxu1 %v1306_v23  ;;  %1249 = vmatpush2.msra.mxu1 %v2092_v31  ;;  %v1181_v31 = vld [vmem:[%s2682_s2 + $0x398] sm:$0xff] }
 0x122   :  { %481 = vmatmul.mubr.f32.gmra.mxu1 %v1308_v25  ;;  %665 = vmatprep.subr.mxu0 %v1181_v31 }
 0x123   :  { %1321 = vtanh.f32 %v239_v51  ;;  %1218 = vmatprep.subr.mxu1 %v1181_v31  ;;  %666 = vmatpush2.msra.mxu0 %v1180_v53 }
 0x124   :  { %v1310_v26 = vpop.eup %1309  ;;  %1323 = vtanh.f32 %v237_v24  ;;  %1250 = vmatpush2.msra.mxu1 %v1180_v53  ;;  %667 = vmatprep.subr.mxu0 %v1179_v54 }
 0x125   :  { %v1312_v28 = vpop.eup %1311  ;;  %486 = vmatprep.mubr.f32.mxu1 %v1310_v26  ;;  %1219 = vmatprep.subr.mxu1 %v1179_v54 }
 0x126   :  { %487 = vmatmul.mubr.f32.gmra.mxu1 %v1312_v28  ;;  %668 = vmatpush2.msra.mxu0 %v1178_v27 }
 0x127   :  { %1251 = vmatpush2.msra.mxu1 %v1178_v27  ;;  %669 = vmatprep.subr.mxu0 %v1177_v55 }
 0x128   :  { %v1314_v29 = vpop.eup %1313  ;;  %1220 = vmatprep.subr.mxu1 %v1177_v55  ;;  %670 = vmatpush2.msra.mxu0 %v1176_v3 }
 0x129   :  { %v1316_v22 = vpop.eup %1315  ;;  %492 = vmatprep.mubr.f32.mxu1 %v1314_v29  ;;  %1252 = vmatpush2.msra.mxu1 %v1176_v3 }
 0x12a   :  { %493 = vmatmul.mubr.f32.gmra.mxu1 %v1316_v22  ;;  %671 = vmatprep.subr.mxu0 %v1175_v56 }
 0x12b   :  { %1221 = vmatprep.subr.mxu1 %v1175_v56  ;;  %672 = vmatpush2.msra.mxu0 %v1174_v57 }
 0x12c   :  { %v1318_v34 = vpop.eup %1317  ;;  %1253 = vmatpush2.msra.mxu1 %v1174_v57  ;;  %673 = vmatprep.subr.mxu0 %v1173_v58 }
 0x12d   :  { %v1320_v52 = vpop.eup %1319  ;;  %498 = vmatprep.mubr.f32.mxu1 %v1318_v34  ;;  %1222 = vmatprep.subr.mxu1 %v1173_v58 }
 0x12e   :  { %499 = vmatmul.mubr.f32.gmra.mxu1 %v1320_v52  ;;  %674 = vmatpush2.msra.mxu0 %v1172_v36 }
 0x12f   :  { %1254 = vmatpush2.msra.mxu1 %v1172_v36  ;;  %675 = vmatprep.subr.mxu0 %v1171_v59 }
 0x130   :  { %v1322_v30 = vpop.eup %1321  ;;  %1223 = vmatprep.subr.mxu1 %v1171_v59  ;;  %676 = vmatpush2.msra.mxu0 %v1170_v37 }
 0x131   :  { %v1324_v35 = vpop.eup %1323  ;;  %504 = vmatprep.mubr.f32.mxu1 %v1322_v30  ;;  %1255 = vmatpush2.msra.mxu1 %v1170_v37 }
 0x132   :  { %505 = vmatmul.mubr.f32.gmra.mxu1 %v1324_v35  ;;  %677 = vmatprep.subr.mxu0 %v1169_v60 }
 0x133   :  { %1224 = vmatprep.subr.mxu1 %v1169_v60  ;;  %678 = vmatpush2.msra.mxu0 %v1168_v61 }
 0x134   :  { %1256 = vmatpush2.msra.mxu1 %v1168_v61  ;;  %679 = vmatprep.subr.mxu0 %v1167_v62 }
 0x135   :  { %1225 = vmatprep.subr.mxu1 %v1167_v62  ;;  %680 = vmatpush2.msra.mxu0 %v1166_v38 }
 0x136   :  { %1257 = vmatpush2.msra.mxu1 %v1166_v38  ;;  %681 = vmatprep.subr.mxu0 %v1165_v63 }
 0x137   :  { %1226 = vmatprep.subr.mxu1 %v1165_v63  ;;  %682 = vmatpush2.msra.mxu0 %v1164_v39 }
 0x138   :  { %1258 = vmatpush2.msra.mxu1 %v1164_v39  ;;  %683 = vmatprep.subr.mxu0 %v1163_v0 }
 0x139   :  { %1227 = vmatprep.subr.mxu1 %v1163_v0  ;;  %684 = vmatpush2.msra.mxu0 %v1162_v1 }
 0x13a   :  { %1259 = vmatpush2.msra.mxu1 %v1162_v1 }
 0x1b6   :  { %v416_v41 = vpop.f32.mrf.mxu1 }
 0x1b7   :  { %v417_v5 = vadd.f32 %v416_v41, %v2249_v40 }
 0x1b8   :  { %v418_v6 = vpop.f32.mrf.mxu1 }
 0x1b9   :  { %v419_v7 = vadd.f32 %v418_v6, %v2252_v4 }
 0x1ba   :  { %v422_v42 = vpop.f32.mrf.mxu1 }
 0x1bb   :  { %1325 = vtanh.f32 %v419_v7  ;;  %v423_v8 = vadd.f32 %v422_v42, %v2249_v40 }
 0x1bc   :  { %1327 = vtanh.f32 %v417_v5  ;;  %v424_v43 = vpop.f32.mrf.mxu1 }
 0x1bd   :  { %v425_v9 = vadd.f32 %v424_v43, %v2252_v4 }
 0x1be   :  { %v428_v10 = vpop.f32.mrf.mxu1 }
 0x1bf   :  { %1329 = vtanh.f32 %v425_v9  ;;  %v429_v11 = vadd.f32 %v428_v10, %v2249_v40 }
 0x1c0   :  { %1331 = vtanh.f32 %v423_v8  ;;  %v430_v44 = vpop.f32.mrf.mxu1 }
 0x1c1   :  { %v431_v12 = vadd.f32 %v430_v44, %v2252_v4 }
 0x1c2   :  { %v434_v45 = vpop.f32.mrf.mxu1 }
 0x1c3   :  { %1333 = vtanh.f32 %v431_v12  ;;  %v435_v13 = vadd.f32 %v434_v45, %v2249_v40 }
 0x1c4   :  { %1335 = vtanh.f32 %v429_v11  ;;  %v436_v14 = vpop.f32.mrf.mxu1 }
 0x1c5   :  { %v437_v15 = vadd.f32 %v436_v14, %v2252_v4 }
 0x1c6   :  { %v440_v46 = vpop.f32.mrf.mxu1 }
 0x1c7   :  { %1337 = vtanh.f32 %v437_v15  ;;  %v441_v47 = vadd.f32 %v440_v46, %v2249_v40 }
 0x1c8   :  { %v1326_v16 = vpop.eup %1325  ;;  %1339 = vtanh.f32 %v435_v13  ;;  %v442_v17 = vpop.f32.mrf.mxu1 }
 0x1c9   :  { %v1328_v18 = vpop.eup %1327  ;;  %v443_v19 = vadd.f32 %v442_v17, %v2252_v4  ;;  %685 = vmatprep.mubr.f32.mxu0 %v1326_v16 }
 0x1ca   :  { %v446_v50 = vpop.f32.mrf.mxu1  ;;  %686 = vmatmul.mubr.f32.vlgmr.msra.gmra.mxu0 %v1328_v18 }
 0x1cb   :  { %1341 = vtanh.f32 %v443_v19  ;;  %v447_v48 = vadd.f32 %v446_v50, %v2249_v40 }
 0x1cc   :  { %v1330_v20 = vpop.eup %1329  ;;  %1343 = vtanh.f32 %v441_v47  ;;  %v448_v21 = vpop.f32.mrf.mxu1 }
 0x1cd   :  { %v1332_v23 = vpop.eup %1331  ;;  %v449_v24 = vadd.f32 %v448_v21, %v2252_v4  ;;  %691 = vmatprep.mubr.f32.mxu0 %v1330_v20 }
 0x1ce   :  { %v452_v49 = vpop.f32.mrf.mxu1  ;;  %692 = vmatmul.mubr.f32.gmra.mxu0 %v1332_v23 }
 0x1cf   :  { %1345 = vtanh.f32 %v449_v24  ;;  %v453_v51 = vadd.f32 %v452_v49, %v2249_v40 }
 0x1d0   :  { %v1334_v25 = vpop.eup %1333  ;;  %1347 = vtanh.f32 %v447_v48  ;;  %v454_v26 = vpop.f32.mrf.mxu1 }
 0x1d1   :  { %v1336_v28 = vpop.eup %1335  ;;  %v455_v29 = vadd.f32 %v454_v26, %v2252_v4  ;;  %697 = vmatprep.mubr.f32.mxu0 %v1334_v25 }
 0x1d2   :  { %v458_v22 = vpop.f32.mrf.mxu1  ;;  %698 = vmatmul.mubr.f32.gmra.mxu0 %v1336_v28 }
 0x1d3   :  { %1349 = vtanh.f32 %v455_v29  ;;  %v459_v52 = vadd.f32 %v458_v22, %v2249_v40 }
 0x1d4   :  { %v1338_v34 = vpop.eup %1337  ;;  %1351 = vtanh.f32 %v453_v51  ;;  %v460_v30 = vpop.f32.mrf.mxu1 }
 0x1d5   :  { %v1340_v35 = vpop.eup %1339  ;;  %v461_v31 = vadd.f32 %v460_v30, %v2252_v4  ;;  %703 = vmatprep.mubr.f32.mxu0 %v1338_v34 }
 0x1d6   :  { %v464_v53 = vpop.f32.mrf.mxu1  ;;  %704 = vmatmul.mubr.f32.gmra.mxu0 %v1340_v35 }
 0x1d7   :  { %1353 = vtanh.f32 %v461_v31  ;;  %v465_v27 = vadd.f32 %v464_v53, %v2249_v40 }
 0x1d8   :  { %v1342_v54 = vpop.eup %1341  ;;  %1355 = vtanh.f32 %v459_v52  ;;  %v466_v55 = vpop.f32.mrf.mxu1 }
 0x1d9   :  { %v1344_v3 = vpop.eup %1343  ;;  %v467_v56 = vadd.f32 %v466_v55, %v2252_v4  ;;  %709 = vmatprep.mubr.f32.mxu0 %v1342_v54 }
 0x1da   :  { %v470_v57 = vpop.f32.mrf.mxu1  ;;  %710 = vmatmul.mubr.f32.gmra.mxu0 %v1344_v3 }
 0x1db   :  { %1357 = vtanh.f32 %v467_v56  ;;  %v471_v36 = vadd.f32 %v470_v57, %v2249_v40 }
 0x1dc   :  { %v1346_v58 = vpop.eup %1345  ;;  %1359 = vtanh.f32 %v465_v27  ;;  %v472_v59 = vpop.f32.mrf.mxu1 }
 0x1dd   :  { %v1348_v37 = vpop.eup %1347  ;;  %v473_v60 = vadd.f32 %v472_v59, %v2252_v4  ;;  %715 = vmatprep.mubr.f32.mxu0 %v1346_v58 }
 0x1de   :  { %v476_v61 = vpop.f32.mrf.mxu1  ;;  %716 = vmatmul.mubr.f32.gmra.mxu0 %v1348_v37 }
 0x1df   :  { %1361 = vtanh.f32 %v473_v60  ;;  %v477_v38 = vadd.f32 %v476_v61, %v2249_v40 }
 0x1e0   :  { %v1350_v62 = vpop.eup %1349  ;;  %1363 = vtanh.f32 %v471_v36  ;;  %v478_v63 = vpop.f32.mrf.mxu1 }
 0x1e1   :  { %v1352_v39 = vpop.eup %1351  ;;  %v479_v0 = vadd.f32 %v478_v63, %v2252_v4  ;;  %721 = vmatprep.mubr.f32.mxu0 %v1350_v62 }
 0x1e2   :  { %v482_v1 = vpop.f32.mrf.mxu1  ;;  %722 = vmatmul.mubr.f32.gmra.mxu0 %v1352_v39 }
 0x1e3   :  { %1365 = vtanh.f32 %v479_v0  ;;  %v483_v41 = vadd.f32 %v482_v1, %v2249_v40 }
 0x1e4   :  { %v1354_v2 = vpop.eup %1353  ;;  %1367 = vtanh.f32 %v477_v38  ;;  %v484_v5 = vpop.f32.mrf.mxu1 }
 0x1e5   :  { %v1356_v6 = vpop.eup %1355  ;;  %v485_v7 = vadd.f32 %v484_v5, %v2252_v4  ;;  %727 = vmatprep.mubr.f32.mxu0 %v1354_v2 }
 0x1e6   :  { %v488_v42 = vpop.f32.mrf.mxu1  ;;  %728 = vmatmul.mubr.f32.gmra.mxu0 %v1356_v6 }
 0x1e7   :  { %1369 = vtanh.f32 %v485_v7  ;;  %v489_v43 = vadd.f32 %v488_v42, %v2249_v40 }
 0x1e8   :  { %v1358_v8 = vpop.eup %1357  ;;  %1371 = vtanh.f32 %v483_v41  ;;  %v490_v9 = vpop.f32.mrf.mxu1 }
 0x1e9   :  { %v1360_v10 = vpop.eup %1359  ;;  %v491_v11 = vadd.f32 %v490_v9, %v2252_v4  ;;  %733 = vmatprep.mubr.f32.mxu0 %v1358_v8 }
 0x1ea   :  { %v494_v44 = vpop.f32.mrf.mxu1  ;;  %734 = vmatmul.mubr.f32.gmra.mxu0 %v1360_v10 }
 0x1eb   :  { %1373 = vtanh.f32 %v491_v11  ;;  %v495_v45 = vadd.f32 %v494_v44, %v2249_v40 }
 0x1ec   :  { %v1362_v12 = vpop.eup %1361  ;;  %1375 = vtanh.f32 %v489_v43  ;;  %v496_v13 = vpop.f32.mrf.mxu1 }
 0x1ed   :  { %v1364_v14 = vpop.eup %1363  ;;  %v497_v15 = vadd.f32 %v496_v13, %v2252_v4  ;;  %739 = vmatprep.mubr.f32.mxu0 %v1362_v12 }
 0x1ee   :  { %v500_v46 = vpop.f32.mrf.mxu1  ;;  %740 = vmatmul.mubr.f32.gmra.mxu0 %v1364_v14 }
 0x1ef   :  { %1377 = vtanh.f32 %v497_v15  ;;  %v501_v47 = vadd.f32 %v500_v46, %v2249_v40 }
 0x1f0   :  { %v1366_v16 = vpop.eup %1365  ;;  %1379 = vtanh.f32 %v495_v45  ;;  %v502_v17 = vpop.f32.mrf.mxu1 }
 0x1f1   :  { %v1368_v18 = vpop.eup %1367  ;;  %v503_v19 = vadd.f32 %v502_v17, %v2252_v4  ;;  %745 = vmatprep.mubr.f32.mxu0 %v1366_v16 }
 0x1f2   :  { %v506_v50 = vpop.f32.mrf.mxu1  ;;  %746 = vmatmul.mubr.f32.gmra.mxu0 %v1368_v18 }
 0x1f3   :  { %1381 = vtanh.f32 %v503_v19  ;;  %v507_v48 = vadd.f32 %v506_v50, %v2249_v40 }
 0x1f4   :  { %v1370_v20 = vpop.eup %1369  ;;  %1383 = vtanh.f32 %v501_v47  ;;  %v508_v21 = vpop.f32.mrf.mxu1 }
 0x1f5   :  { %v1372_v23 = vpop.eup %1371  ;;  %v509_v24 = vadd.f32 %v508_v21, %v2252_v4  ;;  %751 = vmatprep.mubr.f32.mxu0 %v1370_v20  ;;  %v1194_v4 = vld [vmem:[%s2684_s3 + $0x4] sm:$0x3] }
 0x1f6   :  { %752 = vmatmul.mubr.f32.gmra.mxu0 %v1372_v23  ;;  %v2290_v34 = vrot.slane %v1194_v4, %v2100_v33  ;;  %v2340_v19 = vrot.slane %v1194_v4, %v2094_v32 }
 0x1f7   :  { %1385 = vtanh.f32 %v509_v24 }
 0x1f8   :  { %v1374_v49 = vpop.eup %1373  ;;  %1387 = vtanh.f32 %v507_v48 }
 0x1f9   :  { %v1376_v25 = vpop.eup %1375  ;;  %757 = vmatprep.mubr.f32.mxu1 %v1374_v49 }
 0x1fa   :  { %758 = vmatmul.mubr.f32.vlgmr.msra.gmra.mxu1 %v1376_v25 }
 0x1fc   :  { %v1378_v51 = vpop.eup %1377 }
 0x1fd   :  { %v1380_v26 = vpop.eup %1379  ;;  %763 = vmatprep.mubr.f32.mxu1 %v1378_v51 }
 0x1fe   :  { %764 = vmatmul.mubr.f32.gmra.mxu1 %v1380_v26 }
 0x200   :  { %v1382_v28 = vpop.eup %1381 }
 0x201   :  { %v1384_v29 = vpop.eup %1383  ;;  %769 = vmatprep.mubr.f32.mxu1 %v1382_v28 }
 0x202   :  { %770 = vmatmul.mubr.f32.gmra.mxu1 %v1384_v29 }
 0x204   :  { %v1386_v40 = vpop.eup %1385 }
 0x205   :  { %v1388_v22 = vpop.eup %1387  ;;  %775 = vmatprep.mubr.f32.mxu1 %v1386_v40 }
 0x206   :  { %776 = vmatmul.mubr.f32.gmra.mxu1 %v1388_v22 }
 0x28a   :  { %v2292_v52 = vpop.f32.mrf.mxu0 }
 0x28b   :  { %v2353_v32 = vadd.f32 %v2292_v52, %v2340_v19 }
 0x28c   :  { %v689_v30 = vpop.f32.mrf.mxu0 }
 0x28d   :  { %v2295_v35 = vadd.f32 %v689_v30, %v2290_v34 }
 0x28e   :  { %v2297_v31 = vpop.f32.mrf.mxu0 }
 0x28f   :  { %v830_v53 = vand.u32 2147483647, %v2295_v35  ;;  %v782_v28 = vmax.f32 %v2295_v35, 0.0  ;;  %vm798_vm0 = vcmp.ne.f32.partialorder %v2295_v35, %v2295_v35 }
 0x290   :  { %v695_v54 = vpop.f32.mrf.mxu0 }
 0x291   :  { %v846_v27 = vsub.f32 0.0, %v830_v53  ;;  %v2301_v55 = vadd.f32 %v695_v54, %v2290_v34  ;;  %v2369_v54 = vadd.f32 %v2297_v31, %v2340_v19 }
 0x292   :  { %v2303_v3 = vpop.f32.mrf.mxu0 }
 0x293   :  { %v862_v56 = vmul.f32 1.442695, %v846_v27  ;;  %v831_v33 = vand.u32 2147483647, %v2301_v55  ;;  %v783_v27 = vmax.f32 %v2301_v55, 0.0  ;;  %vm799_vm2 = vcmp.ne.f32.partialorder %v2301_v55, %v2301_v55 }
 0x294   :  { %v701_v57 = vpop.f32.mrf.mxu0 }
 0x295   :  { %1389 = vpow2.f32 %v862_v56  ;;  %v847_v58 = vsub.f32 0.0, %v831_v33  ;;  %v2307_v36 = vadd.f32 %v701_v57, %v2290_v34 }
 0x296   :  { %v2309_v59 = vpop.f32.mrf.mxu0 }
 0x297   :  { %v864_v37 = vmul.f32 1.442695, %v847_v58  ;;  %v832_v60 = vand.u32 2147483647, %v2307_v36  ;;  %v2375_v58 = vadd.f32 %v2303_v3, %v2340_v19  ;;  %v2381_v31 = vadd.f32 %v2309_v59, %v2340_v19 }
 0x298   :  { %v707_v61 = vpop.f32.mrf.mxu0  ;;  %vm800_vm3 = vcmp.ne.f32.partialorder %v2307_v36, %v2307_v36 }
 0x299   :  { %1391 = vpow2.f32 %v864_v37  ;;  %v848_v62 = vsub.f32 0.0, %v832_v60  ;;  %v2313_v38 = vadd.f32 %v707_v61, %v2290_v34  ;;  %v784_v37 = vmax.f32 %v2307_v36, 0.0 }
 0x29a   :  { %v2315_v63 = vpop.f32.mrf.mxu0 }
 0x29b   :  { %v866_v39 = vmul.f32 1.442695, %v848_v62  ;;  %v833_v0 = vand.u32 2147483647, %v2313_v38  ;;  %v785_v59 = vmax.f32 %v2313_v38, 0.0  ;;  %vm801_vm5 = vcmp.ne.f32.partialorder %v2313_v38, %v2313_v38 }
 0x29c   :  { %v713_v1 = vpop.f32.mrf.mxu0 }
 0x29d   :  { %1393 = vpow2.f32 %v866_v39  ;;  %v849_v2 = vsub.f32 0.0, %v833_v0  ;;  %v2319_v41 = vadd.f32 %v713_v1, %v2290_v34 }
 0x29e   :  { %v2321_v5 = vpop.f32.mrf.mxu0 }
 0x29f   :  { %v868_v6 = vmul.f32 1.442695, %v849_v2  ;;  %v834_v7 = vand.u32 2147483647, %v2319_v41  ;;  %vm802_vm8 = vcmp.ne.f32.partialorder %v2319_v41, %v2319_v41 }
 0x2a0   :  { %v719_v42 = vpop.f32.mrf.mxu0 }
 0x2a1   :  { %1395 = vpow2.f32 %v868_v6  ;;  %v850_v8 = vsub.f32 0.0, %v834_v7  ;;  %v2325_v43 = vadd.f32 %v719_v42, %v2290_v34 }
 0x2a2   :  { %v1390_v9 = vpop.eup %1389  ;;  %v2327_v10 = vpop.f32.mrf.mxu0 }
 0x2a3   :  { %v894_v11 = vadd.f32 1.0, %v1390_v9  ;;  %v870_v44 = vmul.f32 1.442695, %v850_v8  ;;  %v835_v12 = vand.u32 2147483647, %v2325_v43  ;;  %v897_v23 = vmul.f32 -0.5, %v1390_v9 }
 0x2a4   :  { %v725_v45 = vpop.f32.mrf.mxu0  ;;  %v900_v30 = vand.u32 2147483647, %v1390_v9  ;;  %vm803_vm9 = vcmp.ne.f32.partialorder %v2325_v43, %v2325_v43 }
 0x2a5   :  { %1397 = vlog2.f32 %v894_v11  ;;  %v2331_v13 = vadd.f32 %v725_v45, %v2290_v34  ;;  %v851_v15 = vsub.f32 0.0, %v835_v12  ;;  %v898_v4 = vadd.f32 1.0, %v897_v23 }
 0x2a6   :  { %v2333_v14 = vpop.eup %1391  ;;  %1399 = vpow2.f32 %v870_v44  ;;  %v2335_v46 = vpop.f32.mrf.mxu0  ;;  %vm901_vm1 = vcmp.lt.f32.partialorder %v900_v30, 0.0004427343  ;;  %v2397_v12 = vadd.f32 %v2315_v63, %v2340_v19 }
 0x2a7   :  { %v903_v16 = vadd.f32 1.0, %v2333_v14  ;;  %v872_v47 = vmul.f32 1.442695, %v851_v15  ;;  %v836_v17 = vand.u32 2147483647, %v2331_v13  ;;  %v906_v52 = vmul.f32 -0.5, %v2333_v14 }
 0x2a8   :  { %v731_v18 = vpop.f32.mrf.mxu0  ;;  %v899_v3 = vmul.f32 %v1390_v9, %v898_v4  ;;  %v909_v7 = vand.u32 2147483647, %v2333_v14  ;;  %vm804_vm12 = vcmp.ne.f32.partialorder %v2331_v13, %v2331_v13 }
 0x2a9   :  { %1401 = vlog2.f32 %v903_v16  ;;  %v852_v20 = vsub.f32 0.0, %v836_v17  ;;  %v2345_v48 = vadd.f32 %v731_v18, %v2290_v34  ;;  %v907_v2 = vadd.f32 1.0, %v906_v52  ;;  %v2403_v16 = vld [vmem:[%s2685_s4] ss:$0 sm:$0xff] }
 0x2aa   :  { %v2342_v50 = vpop.eup %1393  ;;  %1403 = vpow2.f32 %v872_v47  ;;  %v2347_v21 = vpop.f32.mrf.mxu0  ;;  %v786_v17 = vmax.f32 %v2319_v41, 0.0  ;;  %vm910_vm4 = vcmp.lt.f32.partialorder %v909_v7, 0.0004427343  ;;  %v2447_v7 = vadd.f32 %v2321_v5, %v2340_v19 }
 0x2ab   :  { %v912_v24 = vadd.f32 1.0, %v2342_v50  ;;  %v874_v49 = vmul.f32 1.442695, %v852_v20  ;;  %v837_v25 = vand.u32 2147483647, %v2345_v48  ;;  %v915_v60 = vmul.f32 -0.5, %v2342_v50 }
 0x2ac   :  { %v737_v51 = vpop.f32.mrf.mxu0  ;;  %v908_v63 = vmul.f32 %v2333_v14, %v907_v2  ;;  %vm805_vm14 = vcmp.ne.f32.partialorder %v2345_v48, %v2345_v48 }
 0x2ad   :  { %1405 = vlog2.f32 %v912_v24  ;;  %v853_v29 = vsub.f32 0.0, %v837_v25  ;;  %v2359_v40 = vadd.f32 %v737_v51, %v2290_v34  ;;  %v916_v44 = vadd.f32 1.0, %v915_v60 }
 0x2ae   :  { %v2355_v26 = vpop.eup %1395  ;;  %1407 = vpow2.f32 %v874_v49  ;;  %v2361_v22 = vpop.f32.mrf.mxu0  ;;  %v918_v25 = vand.u32 2147483647, %v2342_v50 }
 0x2af   :  { %v921_v53 = vadd.f32 1.0, %v2355_v26  ;;  %v876_v56 = vmul.f32 1.442695, %v853_v29  ;;  %v838_v33 = vand.u32 2147483647, %v2359_v40  ;;  %v924_v47 = vmul.f32 -0.5, %v2355_v26 }
 0x2b0   :  { %v743_v57 = vpop.f32.mrf.mxu0  ;;  %v917_v14 = vmul.f32 %v2342_v50, %v916_v44  ;;  %vm919_vm6 = vcmp.lt.f32.partialorder %v918_v25, 0.0004427343 }
 0x2b1   :  { %1409 = vlog2.f32 %v921_v53  ;;  %v854_v62 = vsub.f32 0.0, %v838_v33  ;;  %v2384_v39 = vadd.f32 %v743_v57, %v2290_v34  ;;  %v925_v53 = vadd.f32 1.0, %v924_v47 }
 0x2b2   :  { %v1398_v61 = vpop.eup %1397  ;;  %1411 = vpow2.f32 %v876_v56  ;;  %v2390_v6 = vpop.f32.mrf.mxu0 }
 0x2b3   :  { %v2386_v0 = vpop.eup %1399  ;;  %v896_v1 = vmul.f32 0.6931472, %v1398_v61  ;;  %v878_v8 = vmul.f32 1.442695, %v854_v62  ;;  %v839_v9 = vand.u32 2147483647, %v2384_v39  ;;  %v926_v5 = vmul.f32 %v2355_v26, %v925_v53 }
 0x2b4   :  { %v930_v42 = vadd.f32 1.0, %v2386_v0  ;;  %v749_v24 = vpop.f32.mrf.mxu0  ;;  %v933_v50 = vmul.f32 -0.5, %v2386_v0  ;;  %v927_v62 = vand.u32 2147483647, %v2355_v26 }
 0x2b5   :  { %v902_v11 = vsel %vm901_vm1, %v899_v3, %v896_v1  ;;  %v855_v23 = vsub.f32 0.0, %v839_v9  ;;  %v2421_v56 = vadd.f32 %v749_v24, %v2290_v34  ;;  %v936_v24 = vand.u32 2147483647, %v2386_v0 }
 0x2b6   :  { %v1402_v45 = vpop.eup %1401  ;;  %v1038_v15 = vadd.f32 %v902_v11, %v782_v28  ;;  %1413 = vlog2.f32 %v930_v42  ;;  %v2431_v61 = vpop.f32.mrf.mxu0  ;;  %v2454_v11 = vadd.f32 %v2327_v10, %v2340_v19  ;;  %v934_v47 = vadd.f32 1.0, %v933_v50 }
 0x2b7   :  { %v2407_v18 = vpop.eup %1403  ;;  %v905_v20 = vmul.f32 0.6931472, %v1402_v45  ;;  %1415 = vpow2.f32 %v878_v8  ;;  %v880_v4 = vmul.f32 1.442695, %v855_v23  ;;  %v840_v44 = vand.u32 2147483647, %v2421_v56 }
 0x2b8   :  { %v1054_v49 = vsel %vm798_vm0, %v2295_v35, %v1038_v15  ;;  %v939_v51 = vadd.f32 1.0, %v2407_v18  ;;  %vm928_vm7 = vcmp.lt.f32.partialorder %v927_v62, 0.0004427343  ;;  %v942_v10 = vmul.f32 -0.5, %v2407_v18 }
 0x2b9   :  { %v1077_v28 = vmul.f32 %v2403_v16, %v1054_v49  ;;  %v911_v29 = vsel %vm910_vm4, %v908_v63, %v905_v20  ;;  %v755_v20 = vpop.f32.mrf.mxu0  ;;  %vm937_vm10 = vcmp.lt.f32.partialorder %v936_v24, 0.0004427343  ;;  %v2500_v50 = vadd.f32 %v2335_v46, %v2340_v19 }
 0x2ba   :  { %v1406_v30 = vpop.eup %1405  ;;  %v1039_v52 = vadd.f32 %v911_v29, %v783_v27  ;;  %1417 = vlog2.f32 %v939_v51  ;;  %v2423_v33 = vpop.f32.mrf.mxu1  ;;  %v2480_v51 = vadd.f32 %v755_v20, %v2290_v34  ;;  %vm806_vm1 = vcmp.ne.f32.partialorder %v2359_v40, %v2359_v40 }
 0x2bb   :  { %v2425_v35 = vpop.eup %1407  ;;  %v1093_v57 = vadd.f32 %v1077_v28, %v2353_v32  ;;  %v914_v60 = vmul.f32 0.6931472, %v1406_v30  ;;  %1419 = vpow2.f32 %v880_v4  ;;  %v788_v4 = vmax.f32 %v2331_v13, 0.0 }
 0x2bc   :  { %v1055_v27 = vsel %vm799_vm2, %v2301_v55, %v1039_v52  ;;  %v948_v1 = vadd.f32 1.0, %v2425_v35  ;;  %v2439_v32 = vpop.f32.mrf.mxu1  ;;  %v787_v55 = vmax.f32 %v2325_v43, 0.0  ;;  %v951_v25 = vmul.f32 -0.5, %v2425_v35 }
 0x2bd   :  { %1109 = vst [vmem:[%s2686_s5] sm:$0xff] %v1093_v57  ;;  %v1078_v3 = vmul.f32 %v2403_v16, %v1055_v27  ;;  %v920_v2 = vsel %vm919_vm6, %v917_v14, %v914_v60  ;;  %v935_v14 = vmul.f32 %v2386_v0, %v934_v47  ;;  %v943_v57 = vadd.f32 1.0, %v942_v10 }
 0x2be   :  { %v1410_v42 = vpop.eup %1409  ;;  %v1040_v8 = vadd.f32 %v920_v2, %v784_v37  ;;  %1421 = vlog2.f32 %v948_v1  ;;  %v2469_v23 = vpop.f32.mrf.mxu1  ;;  %v945_v60 = vand.u32 2147483647, %v2407_v18  ;;  %v952_v62 = vadd.f32 1.0, %v951_v25 }
 0x2bf   :  { %v2457_v9 = vpop.eup %1411  ;;  %v1094_v45 = vadd.f32 %v1078_v3, %v2369_v54  ;;  %v923_v15 = vmul.f32 0.6931472, %v1410_v42  ;;  %v841_v1 = vand.u32 2147483647, %v2480_v51  ;;  %v2526_v47 = vadd.f32 %v2439_v32, %v2290_v34 }
 0x2c0   :  { %v1056_v37 = vsel %vm800_vm3, %v2307_v36, %v1040_v8  ;;  %v957_v63 = vadd.f32 1.0, %v2457_v9  ;;  %v856_v36 = vsub.f32 0.0, %v840_v44  ;;  %v960_v8 = vmul.f32 -0.5, %v2457_v9 }
 0x2c1   :  { %1110 = vst [vmem:[%s2686_s5 + $0x8] sm:$0xff] %v1094_v45  ;;  %v1079_v26 = vmul.f32 %v2403_v16, %v1056_v37  ;;  %v929_v54 = vsel %vm928_vm7, %v926_v5, %v923_v15  ;;  %v944_v45 = vmul.f32 %v2407_v18, %v943_v57  ;;  %vm946_vm11 = vcmp.lt.f32.partialorder %v945_v60, 0.0004427343 }
 0x2c2   :  { %v1041_v49 = vadd.f32 %v929_v54, %v785_v59  ;;  %1423 = vlog2.f32 %v957_v63  ;;  %v882_v30 = vmul.f32 1.442695, %v856_v36  ;;  %v857_v15 = vsub.f32 0.0, %v841_v1 }
 0x2c3   :  { %v1414_v28 = vpop.eup %1413  ;;  %v1095_v29 = vadd.f32 %v1079_v26, %v2375_v58  ;;  %v767_v58 = vpop.f32.mrf.mxu1  ;;  %v789_v10 = vmax.f32 %v2345_v48, 0.0  ;;  %v961_v24 = vadd.f32 1.0, %v960_v8  ;;  %vm807_vm3 = vcmp.ne.f32.partialorder %v2384_v39, %v2384_v39 }
 0x2c4   :  { %v2485_v52 = vpop.eup %1415  ;;  %v1057_v59 = vsel %vm801_vm5, %v2313_v38, %v1041_v49  ;;  %v932_v53 = vmul.f32 0.6931472, %v1414_v28  ;;  %1425 = vpow2.f32 %v882_v30  ;;  %v884_v63 = vmul.f32 1.442695, %v857_v15 }
 0x2c5   :  { %1111 = vst [vmem:[%s2686_s5 + $0x10] sm:$0xff] %v1095_v29  ;;  %v1080_v0 = vmul.f32 %v2403_v16, %v1057_v59  ;;  %v966_v38 = vadd.f32 1.0, %v2485_v52  ;;  %v2513_v5 = vpop.f32.mrf.mxu1  ;;  %v969_v32 = vmul.f32 -0.5, %v2485_v52  ;;  %v963_v29 = vand.u32 2147483647, %v2457_v9 }
 0x2c6   :  { %v938_v27 = vsel %vm937_vm10, %v935_v14, %v932_v53  ;;  %v2548_v14 = vadd.f32 %v767_v58, %v2290_v34  ;;  %v962_v59 = vmul.f32 %v2457_v9, %v961_v24  ;;  %vm808_vm5 = vcmp.ne.f32.partialorder %v2421_v56, %v2421_v56 }
 0x2c7   :  { %v1418_v3 = vpop.eup %1417  ;;  %v1096_v2 = vadd.f32 %v1080_v0, %v2381_v31  ;;  %v1042_v42 = vadd.f32 %v938_v27, %v786_v17  ;;  %1427 = vlog2.f32 %v966_v38  ;;  %v954_v17 = vand.u32 2147483647, %v2425_v35  ;;  %v773_v25 = vpop.f32.mrf.mxu1 }
 0x2c8   :  { %v2508_v44 = vpop.eup %1419  ;;  %v941_v46 = vmul.f32 0.6931472, %v1418_v3  ;;  %v2552_v57 = vadd.f32 %v773_v25, %v2290_v34  ;;  %v970_v38 = vadd.f32 1.0, %v969_v32  ;;  %vm964_vm15 = vcmp.lt.f32.partialorder %v963_v29, 0.0004427343 }
 0x2c9   :  { %1112 = vst [vmem:[%s2686_s5 + $0x18] sm:$0xff] %v1096_v2  ;;  %v1058_v31 = vsel %vm802_vm8, %v2319_v41, %v1042_v42  ;;  %v975_v18 = vadd.f32 1.0, %v2508_v44  ;;  %v953_v41 = vmul.f32 %v2425_v35, %v952_v62  ;;  %vm955_vm13 = vcmp.lt.f32.partialorder %v954_v17, 0.0004427343  ;;  %v2556_v62 = vpop.f32.mrf.mxu1 }
 0x2ca   :  { %v1081_v20 = vmul.f32 %v2403_v16, %v1058_v31  ;;  %v947_v37 = vsel %vm946_vm11, %v944_v45, %v941_v46  ;;  %v978_v27 = vmul.f32 -0.5, %v2508_v44  ;;  %v843_v9 = vand.u32 2147483647, %v2548_v14 }
 0x2cb   :  { %v1422_v26 = vpop.eup %1421  ;;  %v1043_v54 = vadd.f32 %v947_v37, %v787_v55  ;;  %1429 = vlog2.f32 %v975_v18  ;;  %v842_v55 = vand.u32 2147483647, %v2526_v47  ;;  %v972_v3 = vand.u32 2147483647, %v2485_v52 }
 0x2cc   :  { %v1097_v36 = vadd.f32 %v1081_v20, %v2397_v12  ;;  %v950_v49 = vmul.f32 0.6931472, %v1422_v26  ;;  %1431 = vpow2.f32 %v884_v63  ;;  %v844_v2 = vand.u32 2147483647, %v2552_v57  ;;  %v779_v20 = vpop.f32.mrf.mxu1 }
 0x2cd   :  { %v1059_v28 = vsel %vm803_vm9, %v2325_v43, %v1043_v54  ;;  %v858_v53 = vsub.f32 0.0, %v842_v55  ;;  %v859_v46 = vsub.f32 0.0, %v843_v9  ;;  %v971_v31 = vmul.f32 %v2485_v52, %v970_v38 }
 0x2ce   :  { %1113 = vst [vmem:[%s2686_s5 + $0x20] sm:$0xff] %v1097_v36  ;;  %v1082_v12 = vmul.f32 %v2403_v16, %v1059_v28  ;;  %v956_v35 = vsel %vm955_vm13, %v953_v41, %v950_v49  ;;  %v979_v17 = vadd.f32 1.0, %v978_v27  ;;  %v860_v26 = vsub.f32 0.0, %v844_v2 }
 0x2cf   :  { %v1424_v30 = vpop.eup %1423  ;;  %v1044_v43 = vadd.f32 %v956_v35, %v788_v4  ;;  %v886_v4 = vmul.f32 1.442695, %v858_v53  ;;  %vm973_vm0 = vcmp.lt.f32.partialorder %v972_v3, 0.0004427343  ;;  %v981_v52 = vand.u32 2147483647, %v2508_v44 }
 0x2d0   :  { %v1098_v60 = vadd.f32 %v1082_v12, %v2447_v7  ;;  %v959_v0 = vmul.f32 0.6931472, %v1424_v30  ;;  %v890_v41 = vmul.f32 1.442695, %v860_v26  ;;  %v2585_v24 = vadd.f32 %v779_v20, %v2290_v34 }
 0x2d1   :  { %v1060_v58 = vsel %vm804_vm12, %v2331_v13, %v1044_v43  ;;  %v2569_v42 = vpop.eup %1425  ;;  %v790_v13 = vmax.f32 %v2359_v40, 0.0  ;;  %1433 = vpow2.f32 %v886_v4  ;;  %v980_v28 = vmul.f32 %v2508_v44, %v979_v17 }
 0x2d2   :  { %1114 = vst [vmem:[%s2686_s5 + $0x28] sm:$0xff] %v1098_v60  ;;  %v1083_v7 = vmul.f32 %v2403_v16, %v1060_v58  ;;  %v965_v1 = vsel %vm964_vm15, %v962_v59, %v959_v0  ;;  %v984_v18 = vadd.f32 1.0, %v2569_v42  ;;  %v791_v34 = vmax.f32 %v2384_v39, 0.0 }
 0x2d3   :  { %v1045_v8 = vadd.f32 %v965_v1, %v789_v10  ;;  %v888_v10 = vmul.f32 1.442695, %v859_v46  ;;  %vm982_vm2 = vcmp.lt.f32.partialorder %v981_v52, 0.0004427343  ;;  %v845_v30 = vand.u32 2147483647, %v2585_v24 }
 0x2d4   :  { %v1428_v45 = vpop.eup %1427  ;;  %v1099_v15 = vadd.f32 %v1083_v7, %v2454_v11  ;;  %1435 = vlog2.f32 %v984_v18  ;;  %v987_v43 = vmul.f32 -0.5, %v2569_v42  ;;  %v990_v4 = vand.u32 2147483647, %v2569_v42 }
 0x2d5   :  { %v1061_v37 = vsel %vm805_vm14, %v2345_v48, %v1045_v8  ;;  %v968_v63 = vmul.f32 0.6931472, %v1428_v45  ;;  %1437 = vpow2.f32 %v888_v10  ;;  %v792_v2 = vmax.f32 %v2421_v56, 0.0 }
 0x2d6   :  { %1115 = vst [vmem:[%s2686_s5 + $0x30] sm:$0xff] %v1099_v15  ;;  %v1084_v11 = vmul.f32 %v2403_v16, %v1061_v37  ;;  %1439 = vpow2.f32 %v890_v41  ;;  %v988_v27 = vadd.f32 1.0, %v987_v43  ;;  %vm991_vm4 = vcmp.lt.f32.partialorder %v990_v4, 0.0004427343 }
 0x2d7   :  { %v974_v54 = vsel %vm973_vm0, %v971_v31, %v968_v63  ;;  %vm809_vm7 = vcmp.ne.f32.partialorder %v2480_v51, %v2480_v51  ;;  %vm810_vm9 = vcmp.ne.f32.partialorder %v2526_v47, %v2526_v47  ;;  %vm811_vm11 = vcmp.ne.f32.partialorder %v2548_v14, %v2548_v14 }
 0x2d8   :  { %v1430_v48 = vpop.eup %1429  ;;  %v1100_v36 = vadd.f32 %v1084_v11, %v2500_v50  ;;  %v1046_v49 = vadd.f32 %v974_v54, %v790_v13  ;;  %v736_v50 = vadd.f32 %v2347_v21, %v2340_v19  ;;  %v742_v21 = vadd.f32 %v2361_v22, %v2340_v19 }
 0x2d9   :  { %v1432_v32 = vpop.eup %1431  ;;  %v977_v25 = vmul.f32 0.6931472, %v1430_v48  ;;  %v989_v22 = vmul.f32 %v2569_v42, %v988_v27  ;;  %v748_v42 = vadd.f32 %v2390_v6, %v2340_v19  ;;  %v793_v11 = vmax.f32 %v2480_v51, 0.0 }
 0x2da   :  { %1116 = vst [vmem:[%s2686_s5 + $0x38] sm:$0xff] %v1100_v36  ;;  %v1062_v29 = vsel %vm806_vm1, %v2359_v40, %v1046_v49  ;;  %v993_v55 = vadd.f32 1.0, %v1432_v32  ;;  %v861_v40 = vsub.f32 0.0, %v845_v30  ;;  %v996_v7 = vmul.f32 -0.5, %v1432_v32 }
 0x2db   :  { %v1085_v12 = vmul.f32 %v2403_v16, %v1062_v29  ;;  %v983_v35 = vsel %vm982_vm2, %v980_v28, %v977_v25  ;;  %v999_v31 = vand.u32 2147483647, %v1432_v32  ;;  %v754_v25 = vadd.f32 %v2431_v61, %v2340_v19 }
 0x2dc   :  { %v1047_v44 = vadd.f32 %v983_v35, %v791_v34  ;;  %1441 = vlog2.f32 %v993_v55  ;;  %v892_v0 = vmul.f32 1.442695, %v861_v40  ;;  %v997_v45 = vadd.f32 1.0, %v996_v7 }
 0x2dd   :  { %v1101_v59 = vadd.f32 %v1085_v12, %v736_v50  ;;  %vm1000_vm6 = vcmp.lt.f32.partialorder %v999_v31, 0.0004427343  ;;  %v794_v55 = vmax.f32 %v2526_v47, 0.0  ;;  %v760_v27 = vadd.f32 %v2423_v33, %v2340_v19 }
 0x2de   :  { %v1063_v53 = vsel %vm807_vm3, %v2384_v39, %v1047_v44  ;;  %v1434_v38 = vpop.eup %1433  ;;  %1443 = vpow2.f32 %v892_v0  ;;  %v998_v26 = vmul.f32 %v1432_v32, %v997_v45  ;;  %v795_v0 = vmax.f32 %v2548_v14, 0.0 }
 0x2df   :  { %1117 = vst [vmem:[%s2686_s5 + $0x40] sm:$0xff] %v1101_v59  ;;  %v1086_v60 = vmul.f32 %v2403_v16, %v1063_v53  ;;  %v1002_v9 = vadd.f32 1.0, %v1434_v38  ;;  %v1005_v37 = vmul.f32 -0.5, %v1434_v38  ;;  %v1008_v6 = vand.u32 2147483647, %v1434_v38 }
 0x2e0   :  { %v766_v33 = vadd.f32 %v2469_v23, %v2340_v19  ;;  %vm812_vm13 = vcmp.ne.f32.partialorder %v2552_v57, %v2552_v57  ;;  %vm813_vm15 = vcmp.ne.f32.partialorder %v2585_v24, %v2585_v24 }
 0x2e1   :  { %v1102_v58 = vadd.f32 %v1086_v60, %v742_v21  ;;  %v1436_v1 = vpop.eup %1435  ;;  %1445 = vlog2.f32 %v1002_v9  ;;  %v1006_v48 = vadd.f32 1.0, %v1005_v37  ;;  %vm1009_vm8 = vcmp.lt.f32.partialorder %v1008_v6, 0.0004427343 }
 0x2e2   :  { %v1438_v39 = vpop.eup %1437  ;;  %v986_v3 = vmul.f32 0.6931472, %v1436_v1  ;;  %v797_v37 = vmax.f32 %v2585_v24, 0.0 }
 0x2e3   :  { %1118 = vst [vmem:[%s2686_s5 + $0x48] sm:$0xff] %v1102_v58  ;;  %v1011_v8 = vadd.f32 1.0, %v1438_v39  ;;  %v2616_v13 = vpop.eup %1439  ;;  %v1014_v36 = vmul.f32 -0.5, %v1438_v39  ;;  %v1007_v12 = vmul.f32 %v1434_v38, %v1006_v48  ;;  %v1017_v44 = vand.u32 2147483647, %v1438_v39 }
 0x2e4   :  { %v992_v46 = vsel %vm991_vm4, %v989_v22, %v986_v3  ;;  %v1020_v17 = vadd.f32 1.0, %v2616_v13  ;;  %v1023_v29 = vmul.f32 -0.5, %v2616_v13  ;;  %v1026_v21 = vand.u32 2147483647, %v2616_v13 }
 0x2e5   :  { %v1048_v15 = vadd.f32 %v992_v46, %v792_v2  ;;  %1447 = vlog2.f32 %v1011_v8  ;;  %v1015_v35 = vadd.f32 1.0, %v1014_v36  ;;  %vm1018_vm10 = vcmp.lt.f32.partialorder %v1017_v44, 0.0004427343 }
 0x2e6   :  { %1449 = vlog2.f32 %v1020_v17  ;;  %v1024_v59 = vadd.f32 1.0, %v1023_v29  ;;  %vm1027_vm12 = vcmp.lt.f32.partialorder %v1026_v21, 0.0004427343 }
 0x2e7   :  { %v1064_v20 = vsel %vm808_vm5, %v2421_v56, %v1048_v15  ;;  %v1016_v53 = vmul.f32 %v1438_v39, %v1015_v35 }
 0x2e8   :  { %v1087_v63 = vmul.f32 %v2403_v16, %v1064_v20  ;;  %v1025_v1 = vmul.f32 %v2616_v13, %v1024_v59 }
 0x2e9   :  { %v1442_v18 = vpop.eup %1441 }
 0x2ea   :  { %v995_v10 = vmul.f32 0.6931472, %v1442_v18  ;;  %v1103_v52 = vadd.f32 %v1087_v63, %v748_v42 }
 0x2eb   :  { %v1444_v56 = vpop.eup %1443 }
 0x2ec   :  { %v1001_v54 = vsel %vm1000_vm6, %v998_v26, %v995_v10  ;;  %1119 = vst [vmem:[%s2686_s5 + $0x50] sm:$0xff] %v1103_v52  ;;  %v1029_v34 = vadd.f32 1.0, %v1444_v56  ;;  %v1032_v3 = vmul.f32 -0.5, %v1444_v56  ;;  %v1035_v31 = vand.u32 2147483647, %v1444_v56 }
 0x2ed   :  { %v1049_v41 = vadd.f32 %v1001_v54, %v793_v11  ;;  %v778_v10 = vadd.f32 %v2556_v62, %v2340_v19 }
 0x2ee   :  { %v1446_v32 = vpop.eup %1445  ;;  %1451 = vlog2.f32 %v1029_v34  ;;  %v1033_v46 = vadd.f32 1.0, %v1032_v3  ;;  %vm1036_vm14 = vcmp.lt.f32.partialorder %v1035_v31, 0.0004427343 }
 0x2ef   :  { %v1065_v49 = vsel %vm809_vm7, %v2480_v51, %v1049_v41  ;;  %v1004_v50 = vmul.f32 0.6931472, %v1446_v32 }
 0x2f0   :  { %v1088_v28 = vmul.f32 %v2403_v16, %v1065_v49  ;;  %v1034_v20 = vmul.f32 %v1444_v56, %v1033_v46 }
 0x2f1   :  { %v1010_v43 = vsel %vm1009_vm8, %v1007_v12, %v1004_v50 }
 0x2f2   :  { %v1104_v30 = vadd.f32 %v1088_v28, %v754_v25  ;;  %v1448_v51 = vpop.eup %1447  ;;  %v1050_v61 = vadd.f32 %v1010_v43, %v794_v55 }
 0x2f3   :  { %v1013_v40 = vmul.f32 0.6931472, %v1448_v51  ;;  %v1450_v38 = vpop.eup %1449 }
 0x2f4   :  { %1120 = vst [vmem:[%s2686_s5 + $0x58] sm:$0xff] %v1104_v30  ;;  %v1066_v60 = vsel %vm810_vm9, %v2526_v47, %v1050_v61  ;;  %v1022_v7 = vmul.f32 0.6931472, %v1450_v38  ;;  %v796_v47 = vmax.f32 %v2552_v57, 0.0 }
 0x2f5   :  { %v1089_v58 = vmul.f32 %v2403_v16, %v1066_v60  ;;  %v1019_v4 = vsel %vm1018_vm10, %v1016_v53, %v1013_v40 }
 0x2f6   :  { %v1051_v9 = vadd.f32 %v1019_v4, %v795_v0  ;;  %v1028_v2 = vsel %vm1027_vm12, %v1025_v1, %v1022_v7 }
 0x2f7   :  { %v1105_v39 = vadd.f32 %v1089_v58, %v760_v27  ;;  %v1052_v13 = vadd.f32 %v1028_v2, %v796_v47 }
 0x2f8   :  { %v1067_v22 = vsel %vm811_vm11, %v2548_v14, %v1051_v9  ;;  %v772_v14 = vadd.f32 %v2513_v5, %v2340_v19 }
 0x2f9   :  { %1121 = vst [vmem:[%s2686_s5 + $0x60] sm:$0xff] %v1105_v39  ;;  %v1090_v8 = vmul.f32 %v2403_v16, %v1067_v22  ;;  %v1068_v15 = vsel %vm812_vm13, %v2552_v57, %v1052_v13 }
 0x2fa   :  { %v1091_v17 = vmul.f32 %v2403_v16, %v1068_v15 }
 0x2fb   :  { %v1106_v45 = vadd.f32 %v1090_v8, %v766_v33  ;;  %v1452_v18 = vpop.eup %1451 }
 0x2fc   :  { %v1107_v23 = vadd.f32 %v1091_v17, %v772_v14  ;;  %v1031_v42 = vmul.f32 0.6931472, %v1452_v18 }
 0x2fd   :  { %1122 = vst [vmem:[%s2686_s5 + $0x68] sm:$0xff] %v1106_v45 }
 0x2fe   :  { %1123 = vst [vmem:[%s2686_s5 + $0x70] sm:$0xff] %v1107_v23  ;;  %v1037_v57 = vsel %vm1036_vm14, %v1034_v20, %v1031_v42 }
 0x2ff   :  { %v1053_v63 = vadd.f32 %v1037_v57, %v797_v37 }
 0x301   :  { %v1069_v5 = vsel %vm813_vm15, %v2585_v24, %v1053_v63 }
 0x302   :  { %v1092_v26 = vmul.f32 %v2403_v16, %v1069_v5 }
 0x304   :  { %v1108_v11 = vadd.f32 %v1092_v26, %v778_v10 }
 0x306   :  { %1124 = vst [vmem:[%s2686_s5 + $0x78] sm:$0xff] %v1108_v11 }

</bundles_post_ra>
